<compile_context>
chip_gen: v7x
topology: tpu7x:2x2x1
jax: 0.10.0
libtpu: 0.0.40
codegen_flags: <defaults>
</compile_context>

<pallas_src>
import functools
import math

import jax
import jax.numpy as jnp
from jax import lax
from jax.experimental import pallas as pl
from jax.experimental.pallas import tpu as pltpu


# --------------------------------------------------------------------------
# small helpers
# --------------------------------------------------------------------------
def _round_up(x, m):
    return ((x + m - 1) // m) * m


def _pick_time_chunk(seq_len, target):
    """Largest divisor of seq_len that is <= target."""
    for tc in range(min(seq_len, max(1, target)), 0, -1):
        if seq_len % tc == 0:
            return tc
    return seq_len


def _pick_rows_block(total_rows, target):
    """Largest divisor of total_rows <= target that is a multiple of 8.
    total_rows is always a multiple of 8 here (batch padded to 8)."""
    target = min(total_rows, max(8, target))
    for rb in range(target, 7, -1):
        if total_rows % rb == 0 and rb % 8 == 0:
            return rb
    return total_rows


def _vmem_limit(block_bytes):
    """Explicit scoped-VMEM request: double-buffered blocks + slack, clamped
    so it is valid on v5e/v6e (128 MiB physical) and v7x (64 MiB physical)."""
    return int(min(max(2 * block_bytes + (8 << 20), 16 << 20), 64 << 20))


def _mxu_dot(a, b):
    """MXU matmul with f32 accumulation; LHS cast to the weight dtype so the
    bf16 weight path feeds bf16 operands into the MXU."""
    if a.dtype != b.dtype:
        a = a.astype(b.dtype)
    return jnp.dot(a, b, preferred_element_type=jnp.float32)


# --------------------------------------------------------------------------
# Kernel 1: input projection (all timesteps, both directions, one big GEMM)
# --------------------------------------------------------------------------
def _proj_first_kernel(x_ref, w_ref, b_ref, gf_ref, gb_ref, *, gpd):
    g = _mxu_dot(x_ref[...], w_ref[...]) + b_ref[...]
    gf_ref[...] = g[:, :gpd]          # forward-direction gates  (rows, 4H)
    gb_ref[...] = g[:, gpd:]          # backward-direction gates (rows, 4H)


def _proj_next_kernel(xf_ref, xb_ref, wf_ref, wb_ref, b_ref, gf_ref, gb_ref,
                      *, gpd):
    g = (_mxu_dot(xf_ref[...], wf_ref[...])
         + _mxu_dot(xb_ref[...], wb_ref[...])
         + b_ref[...])
    gf_ref[...] = g[:, :gpd]
    gb_ref[...] = g[:, gpd:]


def _project_first(x2, w_in, bias, rows_blk):
    R, D = x2.shape
    G = w_in.shape[1]                 # 8H
    gpd = G // 2                      # 4H
    blk_bytes = (rows_blk * D * x2.dtype.itemsize
                 + D * G * w_in.dtype.itemsize
                 + G * 4
                 + 2 * rows_blk * gpd * 4)
    return pl.pallas_call(
        functools.partial(_proj_first_kernel, gpd=gpd),
        out_shape=(jax.ShapeDtypeStruct((R, gpd), jnp.float32),
                   jax.ShapeDtypeStruct((R, gpd), jnp.float32)),
        grid=(R // rows_blk,),
        in_specs=[pl.BlockSpec((rows_blk, D), lambda i: (i, 0)),
                  pl.BlockSpec((D, G), lambda i: (0, 0)),
                  pl.BlockSpec((1, G), lambda i: (0, 0))],
        out_specs=(pl.BlockSpec((rows_blk, gpd), lambda i: (i, 0)),
                   pl.BlockSpec((rows_blk, gpd), lambda i: (i, 0))),
        compiler_params=pltpu.CompilerParams(
            dimension_semantics=("parallel",),
            vmem_limit_bytes=_vmem_limit(blk_bytes)),
    )(x2, w_in, bias)


def _project_next(xf, xb, w_in_f, w_in_b, bias, rows_blk):
    R, H = xf.shape
    G = w_in_f.shape[1]               # 8H
    gpd = G // 2                      # 4H
    blk_bytes = (2 * rows_blk * H * xf.dtype.itemsize
                 + 2 * H * G * w_in_f.dtype.itemsize
                 + G * 4
                 + 2 * rows_blk * gpd * 4)
    return pl.pallas_call(
        functools.partial(_proj_next_kernel, gpd=gpd),
        out_shape=(jax.ShapeDtypeStruct((R, gpd), jnp.float32),
                   jax.ShapeDtypeStruct((R, gpd), jnp.float32)),
        grid=(R // rows_blk,),
        in_specs=[pl.BlockSpec((rows_blk, H), lambda i: (i, 0)),
                  pl.BlockSpec((rows_blk, H), lambda i: (i, 0)),
                  pl.BlockSpec((H, G), lambda i: (0, 0)),
                  pl.BlockSpec((H, G), lambda i: (0, 0)),
                  pl.BlockSpec((1, G), lambda i: (0, 0))],
        out_specs=(pl.BlockSpec((rows_blk, gpd), lambda i: (i, 0)),
                   pl.BlockSpec((rows_blk, gpd), lambda i: (i, 0))),
        compiler_params=pltpu.CompilerParams(
            dimension_semantics=("parallel",),
            vmem_limit_bytes=_vmem_limit(blk_bytes)),
    )(xf, xb, w_in_f, w_in_b, bias)


# --------------------------------------------------------------------------
# shared per-step LSTM gate update (gate math in f32)
# --------------------------------------------------------------------------
def _lstm_gate_update(gx, h, c, wh, hidden):
    H = hidden
    g = gx + _mxu_dot(h, wh)
    i_g = jax.nn.sigmoid(g[:, 0 * H:1 * H])
    f_g = jax.nn.sigmoid(g[:, 1 * H:2 * H])
    g_g = jnp.tanh(g[:, 2 * H:3 * H])
    o_g = jax.nn.sigmoid(g[:, 3 * H:4 * H])
    c_new = f_g * c + i_g * g_g
    h_new = o_g * jnp.tanh(c_new)
    return h_new, c_new


# --------------------------------------------------------------------------
# Kernel 2: fused bidirectional recurrence (intermediate layers)
#   grid axis = time chunks ("arbitrary"); fwd consumes chunk i, bwd consumes
#   chunk NT-1-i; per-direction h/c carried in scratch across the grid.
# --------------------------------------------------------------------------
def _bilstm_mid_kernel(gf_ref, gb_ref, whf_ref, whb_ref, of_ref, ob_ref,
                       hf_sc, cf_sc, hb_sc, cb_sc, *, batch, hidden, t_chunk):
    B, H = batch, hidden

    @pl.when(pl.program_id(0) == 0)
    def _init():
        hf_sc[...] = jnp.zeros_like(hf_sc)
        cf_sc[...] = jnp.zeros_like(cf_sc)
        hb_sc[...] = jnp.zeros_like(hb_sc)
        cb_sc[...] = jnp.zeros_like(cb_sc)

    # hoist weight loads out of the time loop
    whf = whf_ref[...]
    whb = whb_ref[...]
    # TODO(synk): hold whf/whb stationary in the MXU across the loop via
    # pltpu.matmul_push_rhs / matmul_acc_lhs so the (H,4H) weights are not
    # re-pushed through the systolic array every timestep.

    def step(s, carry):
        rf = pl.multiple_of(s * B, B)                    # fwd local time s
        rb = pl.multiple_of((t_chunk - 1 - s) * B, B)    # bwd local time tc-1-s
        # two independent dependency chains: no concat, no mid-vreg slicing
        hf, cf = _lstm_gate_update(gf_ref[pl.ds(rf, B), :],
                                   hf_sc[...], cf_sc[...], whf, H)
        hb, cb = _lstm_gate_update(gb_ref[pl.ds(rb, B), :],
                                   hb_sc[...], cb_sc[...], whb, H)
        hf_sc[...] = hf
        cf_sc[...] = cf
        hb_sc[...] = hb
        cb_sc[...] = cb
        of_ref[pl.ds(rf, B), :] = hf.astype(of_ref.dtype)
        ob_ref[pl.ds(rb, B), :] = hb.astype(ob_ref.dtype)
        return carry

    lax.fori_loop(0, t_chunk, step, 0, unroll=4)


def _bilstm_mid(gates_f, gates_b, whf, whb, *, batch, hidden, seq_len, t_chunk,
                out_dtype):
    B, H, T, tc = batch, hidden, seq_len, t_chunk
    NT = T // tc
    rows_blk = tc * B
    osz = jnp.dtype(out_dtype).itemsize
    blk_bytes = (2 * rows_blk * 4 * H * 4
                 + 2 * H * 4 * H * whf.dtype.itemsize
                 + 2 * rows_blk * H * osz
                 + 4 * B * H * 4)
    return pl.pallas_call(
        functools.partial(_bilstm_mid_kernel, batch=B, hidden=H, t_chunk=tc),
        out_shape=(jax.ShapeDtypeStruct((T * B, H), out_dtype),
                   jax.ShapeDtypeStruct((T * B, H), out_dtype)),
        grid=(NT,),
        in_specs=[pl.BlockSpec((rows_blk, 4 * H), lambda i: (i, 0)),
                  pl.BlockSpec((rows_blk, 4 * H), lambda i, NT=NT: (NT - 1 - i, 0)),
                  pl.BlockSpec((H, 4 * H), lambda i: (0, 0)),
                  pl.BlockSpec((H, 4 * H), lambda i: (0, 0))],
        out_specs=(pl.BlockSpec((rows_blk, H), lambda i: (i, 0)),
                   pl.BlockSpec((rows_blk, H), lambda i, NT=NT: (NT - 1 - i, 0))),
        scratch_shapes=[pltpu.VMEM((B, H), jnp.float32)] * 4,
        compiler_params=pltpu.CompilerParams(
            dimension_semantics=("arbitrary",),
            vmem_limit_bytes=_vmem_limit(blk_bytes)),
    )(gates_f, gates_b, whf, whb)


# --------------------------------------------------------------------------
# Kernel 3: last layer — only out[:, -1, :] is consumed, so emit (B, 2H):
#   full forward recurrence + exactly one backward step.
# --------------------------------------------------------------------------
def _bilstm_last_kernel(gf_ref, gb_last_ref, whf_ref, out_ref, hf_sc, cf_sc,
                        *, batch, hidden, t_chunk):
    B, H = batch, hidden

    @pl.when(pl.program_id(0) == 0)
    def _init():
        hf_sc[...] = jnp.zeros_like(hf_sc)
        cf_sc[...] = jnp.zeros_like(cf_sc)

    whf = whf_ref[...]

    def step(s, carry):
        rf = pl.multiple_of(s * B, B)
        hf, cf = _lstm_gate_update(gf_ref[pl.ds(rf, B), :],
                                   hf_sc[...], cf_sc[...], whf, H)
        hf_sc[...] = hf
        cf_sc[...] = cf
        return carry

    lax.fori_loop(0, t_chunk, step, 0, unroll=4)

    # The (B, 2H) output block is resident across the whole grid: write it
    # exactly once, on the last time chunk.
    @pl.when(pl.program_id(0) == pl.num_programs(0) - 1)
    def _finalize():
        out_ref[:, :H] = hf_sc[...]
        # Backward direction at t = T-1 is its first step from zero state, so
        # the recurrent term vanishes and a single gate evaluation suffices.
        gb = gb_last_ref[...]
        i_g = jax.nn.sigmoid(gb[:, 0 * H:1 * H])
        g_g = jnp.tanh(gb[:, 2 * H:3 * H])
        o_g = jax.nn.sigmoid(gb[:, 3 * H:4 * H])
        out_ref[:, H:] = o_g * jnp.tanh(i_g * g_g)


def _bilstm_last(gates_f, gates_b_last, whf, *, batch, hidden, seq_len, t_chunk):
    B, H, T, tc = batch, hidden, seq_len, t_chunk
    NT = T // tc
    rows_blk = tc * B
    blk_bytes = (rows_blk * 4 * H * 4
                 + B * 4 * H * 4
                 + H * 4 * H * whf.dtype.itemsize
                 + B * 2 * H * 4
                 + 2 * B * H * 4)
    return pl.pallas_call(
        functools.partial(_bilstm_last_kernel, batch=B, hidden=H, t_chunk=tc),
        out_shape=jax.ShapeDtypeStruct((B, 2 * H), jnp.float32),
        grid=(NT,),
        in_specs=[pl.BlockSpec((rows_blk, 4 * H), lambda i: (i, 0)),
                  # backward gates: only the B rows of global t = T-1
                  pl.BlockSpec((B, 4 * H), lambda i: (0, 0)),
                  pl.BlockSpec((H, 4 * H), lambda i: (0, 0))],
        out_specs=pl.BlockSpec((B, 2 * H), lambda i: (0, 0)),
        scratch_shapes=[pltpu.VMEM((B, H), jnp.float32),
                        pltpu.VMEM((B, H), jnp.float32)],
        compiler_params=pltpu.CompilerParams(
            dimension_semantics=("arbitrary",),
            vmem_limit_bytes=_vmem_limit(blk_bytes)),
    )(gates_f, gates_b_last, whf)


# --------------------------------------------------------------------------
# Forward pass (equivalent of SequenceEncoder.forward)
# --------------------------------------------------------------------------
def sequence_encoder_forward(x_btd, packed_params, *, time_chunk=32,
                             proj_rows_target=512):
    """x (B, T, D) -> (B, 2H). packed_params from pack_params()."""
    B, T, _ = x_btd.shape
    # Pad batch to a multiple of 8 so recurrent matmul LHS / (B,H) stores fill
    # whole sublanes; padded rows are discarded at the end.
    Bp = _round_up(B, 8)
    if Bp != B:
        x_btd = jnp.pad(x_btd, ((0, Bp - B), (0, 0), (0, 0)))
    tc = _pick_time_chunk(T, time_chunk)
    rows = T * Bp
    proj_rows = _pick_rows_block(rows, proj_rows_target)   # decoupled from tc
    # time-major, flattened rows: row = t*Bp + b
    x2 = jnp.transpose(x_btd, (1, 0, 2)).reshape(rows, -1)

    num_layers = len(packed_params)
    out_f = out_b = None
    result = None
    for l, p in enumerate(packed_params):
        H = p["whf"].shape[0]
        if l == 0:
            gates_f, gates_b = _project_first(x2, p["w_in"], p["bias"],
                                              proj_rows)
        else:
            gates_f, gates_b = _project_next(out_f, out_b, p["w_in_f"],
                                             p["w_in_b"], p["bias"], proj_rows)
        if l + 1 < num_layers:
            out_f, out_b = _bilstm_mid(
                gates_f, gates_b, p["whf"], p["whb"],
                batch=Bp, hidden=H, seq_len=T, t_chunk=tc,
                out_dtype=p["whf"].dtype)
        else:
            gb_last = gates_b[(T - 1) * Bp:, :]             # (Bp, 4H), t = T-1
            result = _bilstm_last(gates_f, gb_last, p["whf"],
                                  batch=Bp, hidden=H, seq_len=T, t_chunk=tc)
    return result[:B]


# --------------------------------------------------------------------------
# Parameters: PyTorch-layout init + packing to kernel layout
# --------------------------------------------------------------------------
def init_params(key, feature_dim, hidden_dim, num_layers):
    """PyTorch nn.LSTM-style uniform(-1/sqrt(H), 1/sqrt(H)) init, raw layout:
    per layer a tuple of two directions of (w_ih, w_hh, b_ih, b_hh)."""
    k = 1.0 / math.sqrt(hidden_dim)
    layers = []
    d_in = feature_dim
    for _ in range(num_layers):
        dirs = []
        for _d in range(2):
            key, k1, k2, k3, k4 = jax.random.split(key, 5)
            w_ih = jax.random.uniform(k1, (4 * hidden_dim, d_in),
                                      minval=-k, maxval=k, dtype=jnp.float32)
            w_hh = jax.random.uniform(k2, (4 * hidden_dim, hidden_dim),
                                      minval=-k, maxval=k, dtype=jnp.float32)
            b_ih = jax.random.uniform(k3, (4 * hidden_dim,),
                                      minval=-k, maxval=k, dtype=jnp.float32)
            b_hh = jax.random.uniform(k4, (4 * hidden_dim,),
                                      minval=-k, maxval=k, dtype=jnp.float32)
            dirs.append((w_ih, w_hh, b_ih, b_hh))
        layers.append(tuple(dirs))
        d_in = 2 * hidden_dim
    return layers


def pack_params(raw_params, compute_dtype=jnp.float32):
    """Pre-transpose / fuse weights into the layout the kernels expect.
    compute_dtype=jnp.bfloat16 makes every MXU operand (weights and the
    inter-layer h activations) bf16; biases / gate math stay f32."""
    cd = compute_dtype
    packed = []
    for l, layer in enumerate(raw_params):
        (wif, whf, bif, bhf), (wib, whb, bib, bhb) = layer
        H = whf.shape[1]
        entry = {
            "whf": jnp.transpose(whf).astype(cd),                     # (H, 4H)
            "whb": jnp.transpose(whb).astype(cd),                     # (H, 4H)
            "bias": jnp.concatenate([bif + bhf, bib + bhb])
                       .reshape(1, 8 * H).astype(jnp.float32),
        }
        if l == 0:
            entry["w_in"] = jnp.concatenate(
                [jnp.transpose(wif), jnp.transpose(wib)], axis=1).astype(cd)
        else:
            # previous layer output is kept as separate fwd / bwd halves
            entry["w_in_f"] = jnp.concatenate(
                [jnp.transpose(wif[:, :H]), jnp.transpose(wib[:, :H])],
                axis=1).astype(cd)
            entry["w_in_b"] = jnp.concatenate(
                [jnp.transpose(wif[:, H:]), jnp.transpose(wib[:, H:])],
                axis=1).astype(cd)
        packed.append(entry)
    return packed


# --------------------------------------------------------------------------
# pure-JAX reference (for the self-check)
# --------------------------------------------------------------------------
def _ref_forward(x_btd, raw_params):
    x = x_btd                                            # (B, T, D)
    B, T, _ = x.shape
    for layer in raw_params:
        outs = []
        for d, (w_ih, w_hh, b_ih, b_hh) in enumerate(layer):
            H = w_hh.shape[1]
            h = jnp.zeros((B, H), jnp.float32)
            c = jnp.zeros((B, H), jnp.float32)
            out = [None] * T
            order = range(T - 1, -1, -1) if d == 1 else range(T)
            for t in order:
                gates = x[:, t, :] @ w_ih.T + h @ w_hh.T + b_ih + b_hh
                i_g = jax.nn.sigmoid(gates[:, 0 * H:1 * H])
                f_g = jax.nn.sigmoid(gates[:, 1 * H:2 * H])
                g_g = jnp.tanh(gates[:, 2 * H:3 * H])
                o_g = jax.nn.sigmoid(gates[:, 3 * H:4 * H])
                c = f_g * c + i_g * g_g
                h = o_g * jnp.tanh(c)
                out[t] = h
            outs.append(jnp.stack(out, axis=1))          # (B, T, H)
        x = jnp.concatenate(outs, axis=-1)               # (B, T, 2H)
    return x[:, -1, :]


if __name__ == "__main__":
    B, T = 2, 8
    feature_dim, hidden_dim, num_layers = 16, 32, 2

    key = jax.random.PRNGKey(0)
    key, xk, pk = jax.random.split(key, 3)
    x = jax.random.normal(xk, (B, T, feature_dim), dtype=jnp.float32)
    raw_params = init_params(pk, feature_dim, hidden_dim, num_layers)
    ref = _ref_forward(x, raw_params)

    # time_chunk=4 -> 2 time chunks: exercises the streamed, state-carrying
    # grid path (and the reversed index maps of the backward direction).
    fwd = jax.jit(functools.partial(sequence_encoder_forward, time_chunk=4))

    # f32 MXU path
    packed_f32 = pack_params(raw_params, compute_dtype=jnp.float32)
    out_f32 = jax.block_until_ready(fwd(x, packed_f32))
    assert out_f32.shape == (B, 2 * hidden_dim), out_f32.shape
    err32 = float(jnp.max(jnp.abs(out_f32 - ref)))
    assert err32 < 1e-3, f"f32 max abs err {err32}"

    # bf16 MXU-input path (weights + inter-layer activations bf16, gates f32)
    packed_bf16 = pack_params(raw_params, compute_dtype=jnp.bfloat16)
    out_bf16 = jax.block_until_ready(fwd(x, packed_bf16))
    assert out_bf16.shape == (B, 2 * hidden_dim), out_bf16.shape
    err16 = float(jnp.max(jnp.abs(out_bf16 - ref)))
    assert err16 < 5e-2, f"bf16 max abs err {err16}"

    print("KERNEL_OK")
</pallas_src>

<mosaic_0001>
module attributes {stable_mosaic.version = 11 : i64} {
  func.func @_proj_first_kernel(%arg0: i32, %arg1: memref<64x16xf32, #tpu.memory_space<vmem>>, %arg2: memref<16x256xf32, #tpu.memory_space<vmem>>, %arg3: memref<1x256xf32, #tpu.memory_space<vmem>>, %arg4: memref<64x128xf32, #tpu.memory_space<vmem>>, %arg5: memref<64x128xf32, #tpu.memory_space<vmem>>) attributes {dimension_semantics = [#tpu.dimension_semantics<parallel>], iteration_bounds = array<i64: 1>, scalar_prefetch = 0 : i64, scratch_operands = 0 : i64, tpu.core_type = #tpu.core_type<tc>, window_params = [{transform_indices = @transform_0, window_bounds = array<i64: 64, 16>}, {pipeline_mode = #tpu.pipeline_mode<synchronous>, transform_indices = @transform_1, window_bounds = array<i64: 16, 256>}, {pipeline_mode = #tpu.pipeline_mode<synchronous>, transform_indices = @transform_2, window_bounds = array<i64: 1, 256>}, {transform_indices = @transform_3, window_bounds = array<i64: 64, 128>}, {transform_indices = @transform_4, window_bounds = array<i64: 64, 128>}]} {
    %c0 = arith.constant 0 : index
    %c0_0 = arith.constant 0 : index
    %0 = vector.load %arg1[%c0, %c0_0] : memref<64x16xf32, #tpu.memory_space<vmem>>, vector<64x16xf32>
    %c0_1 = arith.constant 0 : index
    %c0_2 = arith.constant 0 : index
    %1 = vector.load %arg2[%c0_1, %c0_2] : memref<16x256xf32, #tpu.memory_space<vmem>>, vector<16x256xf32>
    %cst = arith.constant dense<0.000000e+00> : vector<64x256xf32>
    %2 = tpu.matmul %0, %1, %cst {dimension_numbers = #tpu.dot_dimension_numbers<[1], [0], [0], [1], [0, 0, 1, 1], [], []>} : vector<64x16xf32>, vector<16x256xf32>, vector<64x256xf32> -> vector<64x256xf32>
    %c0_3 = arith.constant 0 : index
    %c0_4 = arith.constant 0 : index
    %3 = vector.load %arg3[%c0_3, %c0_4] : memref<1x256xf32, #tpu.memory_space<vmem>>, vector<1x256xf32>
    %4 = vector.broadcast %3 : vector<1x256xf32> to vector<64x256xf32>
    %5 = arith.addf %2, %4 : vector<64x256xf32>
    %6 = vector.extract_strided_slice %5 {offsets = [0, 0], sizes = [64, 128], strides = [1, 1]} : vector<64x256xf32> to vector<64x128xf32>
    %c0_5 = arith.constant 0 : index
    %c0_6 = arith.constant 0 : index
    %7 = vector.load %arg4[%c0_5, %c0_6] : memref<64x128xf32, #tpu.memory_space<vmem>>, vector<64x128xf32>
    tpu.vector_store %arg4[%c0_5, %c0_6], %6 {strides = array<i32>} : memref<64x128xf32, #tpu.memory_space<vmem>>, vector<64x128xf32>,
    %8 = vector.extract_strided_slice %5 {offsets = [0, 128], sizes = [64, 128], strides = [1, 1]} : vector<64x256xf32> to vector<64x128xf32>
    %c0_7 = arith.constant 0 : index
    %c0_8 = arith.constant 0 : index
    %9 = vector.load %arg5[%c0_7, %c0_8] : memref<64x128xf32, #tpu.memory_space<vmem>>, vector<64x128xf32>
    tpu.vector_store %arg5[%c0_7, %c0_8], %8 {strides = array<i32>} : memref<64x128xf32, #tpu.memory_space<vmem>>, vector<64x128xf32>,
    return
  }
  func.func @transform_0(%arg0: i32) -> (i32, i32) {
    %c0_i32 = arith.constant 0 : i32
    %c0_i32_0 = arith.constant 0 : i32
    return %arg0, %c0_i32 : i32, i32
  }
  func.func @transform_1(%arg0: i32) -> (i32, i32) {
    %c0_i32 = arith.constant 0 : i32
    %c0_i32_0 = arith.constant 0 : i32
    %c0_i32_1 = arith.constant 0 : i32
    return %c0_i32, %c0_i32_0 : i32, i32
  }
  func.func @transform_2(%arg0: i32) -> (i32, i32) {
    %c0_i32 = arith.constant 0 : i32
    %c0_i32_0 = arith.constant 0 : i32
    %c0_i32_1 = arith.constant 0 : i32
    return %c0_i32, %c0_i32_0 : i32, i32
  }
  func.func @transform_3(%arg0: i32) -> (i32, i32) {
    %c0_i32 = arith.constant 0 : i32
    %c0_i32_0 = arith.constant 0 : i32
    return %arg0, %c0_i32 : i32, i32
  }
  func.func @transform_4(%arg0: i32) -> (i32, i32) {
    %c0_i32 = arith.constant 0 : i32
    %c0_i32_0 = arith.constant 0 : i32
    return %arg0, %c0_i32 : i32, i32
  }
}

module attributes {stable_mosaic.version = 11 : i64} {
  func.func @_bilstm_mid_kernel(%arg0: i32, %arg1: memref<32x128xf32, #tpu.memory_space<vmem>>, %arg2: memref<32x128xf32, #tpu.memory_space<vmem>>, %arg3: memref<32x128xf32, #tpu.memory_space<vmem>>, %arg4: memref<32x128xf32, #tpu.memory_space<vmem>>, %arg5: memref<32x32xf32, #tpu.memory_space<vmem>>, %arg6: memref<32x32xf32, #tpu.memory_space<vmem>>, %arg7: memref<8x32xf32, #tpu.memory_space<vmem>>, %arg8: memref<8x32xf32, #tpu.memory_space<vmem>>, %arg9: memref<8x32xf32, #tpu.memory_space<vmem>>, %arg10: memref<8x32xf32, #tpu.memory_space<vmem>>) attributes {dimension_semantics = [#tpu.dimension_semantics<arbitrary>], iteration_bounds = array<i64: 2>, scalar_prefetch = 0 : i64, scratch_operands = 4 : i64, tpu.core_type = #tpu.core_type<tc>, window_params = [{transform_indices = @transform_0, window_bounds = array<i64: 32, 128>}, {transform_indices = @transform_1, window_bounds = array<i64: 32, 128>}, {pipeline_mode = #tpu.pipeline_mode<synchronous>, transform_indices = @transform_2, window_bounds = array<i64: 32, 128>}, {pipeline_mode = #tpu.pipeline_mode<synchronous>, transform_indices = @transform_3, window_bounds = array<i64: 32, 128>}, {transform_indices = @transform_4, window_bounds = array<i64: 32, 32>}, {transform_indices = @transform_5, window_bounds = array<i64: 32, 32>}]} {
    %c0_i32 = arith.constant 0 : i32
    %0 = arith.cmpi eq, %arg0, %c0_i32 : i32
    %1 = arith.extui %0 : i1 to i32
    %c0_i32_0 = arith.constant 0 : i32
    %2 = arith.cmpi ne, %1, %c0_i32_0 : i32
    scf.if %2 {
      %cst_127 = arith.constant 0.000000e+00 : f32
      %305 = vector.broadcast %cst_127 : f32 to vector<8x32xf32>
      %c0_128 = arith.constant 0 : index
      %c0_129 = arith.constant 0 : index
      %306 = vector.load %arg7[%c0_128, %c0_129] : memref<8x32xf32, #tpu.memory_space<vmem>>, vector<8x32xf32>
      tpu.vector_store %arg7[%c0_128, %c0_129], %305 {strides = array<i32>} : memref<8x32xf32, #tpu.memory_space<vmem>>, vector<8x32xf32>,
      %cst_130 = arith.constant 0.000000e+00 : f32
      %307 = vector.broadcast %cst_130 : f32 to vector<8x32xf32>
      %c0_131 = arith.constant 0 : index
      %c0_132 = arith.constant 0 : index
      %308 = vector.load %arg8[%c0_131, %c0_132] : memref<8x32xf32, #tpu.memory_space<vmem>>, vector<8x32xf32>
      tpu.vector_store %arg8[%c0_131, %c0_132], %307 {strides = array<i32>} : memref<8x32xf32, #tpu.memory_space<vmem>>, vector<8x32xf32>,
      %cst_133 = arith.constant 0.000000e+00 : f32
      %309 = vector.broadcast %cst_133 : f32 to vector<8x32xf32>
      %c0_134 = arith.constant 0 : index
      %c0_135 = arith.constant 0 : index
      %310 = vector.load %arg9[%c0_134, %c0_135] : memref<8x32xf32, #tpu.memory_space<vmem>>, vector<8x32xf32>
      tpu.vector_store %arg9[%c0_134, %c0_135], %309 {strides = array<i32>} : memref<8x32xf32, #tpu.memory_space<vmem>>, vector<8x32xf32>,
      %cst_136 = arith.constant 0.000000e+00 : f32
      %311 = vector.broadcast %cst_136 : f32 to vector<8x32xf32>
      %c0_137 = arith.constant 0 : index
      %c0_138 = arith.constant 0 : index
      %312 = vector.load %arg10[%c0_137, %c0_138] : memref<8x32xf32, #tpu.memory_space<vmem>>, vector<8x32xf32>
      tpu.vector_store %arg10[%c0_137, %c0_138], %311 {strides = array<i32>} : memref<8x32xf32, #tpu.memory_space<vmem>>, vector<8x32xf32>,
    } else {
    }
    %c0 = arith.constant 0 : index
    %c0_1 = arith.constant 0 : index
    %3 = vector.load %arg3[%c0, %c0_1] : memref<32x128xf32, #tpu.memory_space<vmem>>, vector<32x128xf32>
    %c0_2 = arith.constant 0 : index
    %c0_3 = arith.constant 0 : index
    %4 = vector.load %arg4[%c0_2, %c0_3] : memref<32x128xf32, #tpu.memory_space<vmem>>, vector<32x128xf32>
    %c0_i32_4 = arith.constant 0 : i32
    %c8_i32 = arith.constant 8 : i32
    %5 = arith.muli %c0_i32_4, %c8_i32 : i32
    %6 = tpu.assume_multiple %5, 8 : i32
    %c3_i32 = arith.constant 3 : i32
    %7 = arith.subi %c3_i32, %c0_i32_4 : i32
    %c8_i32_5 = arith.constant 8 : i32
    %8 = arith.muli %7, %c8_i32_5 : i32
    %9 = tpu.assume_multiple %8, 8 : i32
    %10 = arith.index_cast %6 : i32 to index
    %c0_6 = arith.constant 0 : index
    %11 = vector.load %arg1[%10, %c0_6] : memref<32x128xf32, #tpu.memory_space<vmem>>, vector<8x128xf32>
    %c0_7 = arith.constant 0 : index
    %c0_8 = arith.constant 0 : index
    %12 = vector.load %arg7[%c0_7, %c0_8] : memref<8x32xf32, #tpu.memory_space<vmem>>, vector<8x32xf32>
    %c0_9 = arith.constant 0 : index
    %c0_10 = arith.constant 0 : index
    %13 = vector.load %arg8[%c0_9, %c0_10] : memref<8x32xf32, #tpu.memory_space<vmem>>, vector<8x32xf32>
    %cst = arith.constant dense<0.000000e+00> : vector<8x128xf32>
    %14 = tpu.matmul %12, %3, %cst {dimension_numbers = #tpu.dot_dimension_numbers<[1], [0], [0], [1], [0, 0, 1, 1], [], []>} : vector<8x32xf32>, vector<32x128xf32>, vector<8x128xf32> -> vector<8x128xf32>
    %15 = arith.addf %11, %14 : vector<8x128xf32>
    %16 = vector.extract_strided_slice %15 {offsets = [0, 0], sizes = [8, 32], strides = [1, 1]} : vector<8x128xf32> to vector<8x32xf32>
    %17 = arith.negf %16 : vector<8x32xf32>
    %18 = math.exp %17 : vector<8x32xf32>
    %cst_11 = arith.constant 1.000000e+00 : f32
    %19 = vector.broadcast %cst_11 : f32 to vector<8x32xf32>
    %20 = arith.addf %19, %18 : vector<8x32xf32>
    %21 = arith.divf %19, %20 : vector<8x32xf32>
    %22 = vector.extract_strided_slice %15 {offsets = [0, 32], sizes = [8, 32], strides = [1, 1]} : vector<8x128xf32> to vector<8x32xf32>
    %23 = arith.negf %22 : vector<8x32xf32>
    %24 = math.exp %23 : vector<8x32xf32>
    %cst_12 = arith.constant 1.000000e+00 : f32
    %25 = vector.broadcast %cst_12 : f32 to vector<8x32xf32>
    %26 = arith.addf %25, %24 : vector<8x32xf32>
    %27 = arith.divf %25, %26 : vector<8x32xf32>
    %28 = vector.extract_strided_slice %15 {offsets = [0, 64], sizes = [8, 32], strides = [1, 1]} : vector<8x128xf32> to vector<8x32xf32>
    %29 = math.tanh %28 : vector<8x32xf32>
    %30 = vector.extract_strided_slice %15 {offsets = [0, 96], sizes = [8, 32], strides = [1, 1]} : vector<8x128xf32> to vector<8x32xf32>
    %31 = arith.negf %30 : vector<8x32xf32>
    %32 = math.exp %31 : vector<8x32xf32>
    %cst_13 = arith.constant 1.000000e+00 : f32
    %33 = vector.broadcast %cst_13 : f32 to vector<8x32xf32>
    %34 = arith.addf %33, %32 : vector<8x32xf32>
    %35 = arith.divf %33, %34 : vector<8x32xf32>
    %36 = arith.mulf %27, %13 : vector<8x32xf32>
    %37 = arith.mulf %21, %29 : vector<8x32xf32>
    %38 = arith.addf %36, %37 : vector<8x32xf32>
    %39 = math.tanh %38 : vector<8x32xf32>
    %40 = arith.mulf %35, %39 : vector<8x32xf32>
    %41 = arith.index_cast %9 : i32 to index
    %c0_14 = arith.constant 0 : index
    %42 = vector.load %arg2[%41, %c0_14] : memref<32x128xf32, #tpu.memory_space<vmem>>, vector<8x128xf32>
    %c0_15 = arith.constant 0 : index
    %c0_16 = arith.constant 0 : index
    %43 = vector.load %arg9[%c0_15, %c0_16] : memref<8x32xf32, #tpu.memory_space<vmem>>, vector<8x32xf32>
    %c0_17 = arith.constant 0 : index
    %c0_18 = arith.constant 0 : index
    %44 = vector.load %arg10[%c0_17, %c0_18] : memref<8x32xf32, #tpu.memory_space<vmem>>, vector<8x32xf32>
    %cst_19 = arith.constant dense<0.000000e+00> : vector<8x128xf32>
    %45 = tpu.matmul %43, %4, %cst_19 {dimension_numbers = #tpu.dot_dimension_numbers<[1], [0], [0], [1], [0, 0, 1, 1], [], []>} : vector<8x32xf32>, vector<32x128xf32>, vector<8x128xf32> -> vector<8x128xf32>
    %46 = arith.addf %42, %45 : vector<8x128xf32>
    %47 = vector.extract_strided_slice %46 {offsets = [0, 0], sizes = [8, 32], strides = [1, 1]} : vector<8x128xf32> to vector<8x32xf32>
    %48 = arith.negf %47 : vector<8x32xf32>
    %49 = math.exp %48 : vector<8x32xf32>
    %cst_20 = arith.constant 1.000000e+00 : f32
    %50 = vector.broadcast %cst_20 : f32 to vector<8x32xf32>
    %51 = arith.addf %50, %49 : vector<8x32xf32>
    %52 = arith.divf %50, %51 : vector<8x32xf32>
    %53 = vector.extract_strided_slice %46 {offsets = [0, 32], sizes = [8, 32], strides = [1, 1]} : vector<8x128xf32> to vector<8x32xf32>
    %54 = arith.negf %53 : vector<8x32xf32>
    %55 = math.exp %54 : vector<8x32xf32>
    %cst_21 = arith.constant 1.000000e+00 : f32
    %56 = vector.broadcast %cst_21 : f32 to vector<8x32xf32>
    %57 = arith.addf %56, %55 : vector<8x32xf32>
    %58 = arith.divf %56, %57 : vector<8x32xf32>
    %59 = vector.extract_strided_slice %46 {offsets = [0, 64], sizes = [8, 32], strides = [1, 1]} : vector<8x128xf32> to vector<8x32xf32>
    %60 = math.tanh %59 : vector<8x32xf32>
    %61 = vector.extract_strided_slice %46 {offsets = [0, 96], sizes = [8, 32], strides = [1, 1]} : vector<8x128xf32> to vector<8x32xf32>
    %62 = arith.negf %61 : vector<8x32xf32>
    %63 = math.exp %62 : vector<8x32xf32>
    %cst_22 = arith.constant 1.000000e+00 : f32
    %64 = vector.broadcast %cst_22 : f32 to vector<8x32xf32>
    %65 = arith.addf %64, %63 : vector<8x32xf32>
    %66 = arith.divf %64, %65 : vector<8x32xf32>
    %67 = arith.mulf %58, %44 : vector<8x32xf32>
    %68 = arith.mulf %52, %60 : vector<8x32xf32>
    %69 = arith.addf %67, %68 : vector<8x32xf32>
    %70 = math.tanh %69 : vector<8x32xf32>
    %71 = arith.mulf %66, %70 : vector<8x32xf32>
    %c0_23 = arith.constant 0 : index
    %c0_24 = arith.constant 0 : index
    %72 = vector.load %arg7[%c0_23, %c0_24] : memref<8x32xf32, #tpu.memory_space<vmem>>, vector<8x32xf32>
    tpu.vector_store %arg7[%c0_23, %c0_24], %40 {strides = array<i32>} : memref<8x32xf32, #tpu.memory_space<vmem>>, vector<8x32xf32>,
    %c0_25 = arith.constant 0 : index
    %c0_26 = arith.constant 0 : index
    %73 = vector.load %arg8[%c0_25, %c0_26] : memref<8x32xf32, #tpu.memory_space<vmem>>, vector<8x32xf32>
    tpu.vector_store %arg8[%c0_25, %c0_26], %38 {strides = array<i32>} : memref<8x32xf32, #tpu.memory_space<vmem>>, vector<8x32xf32>,
    %c0_27 = arith.constant 0 : index
    %c0_28 = arith.constant 0 : index
    %74 = vector.load %arg9[%c0_27, %c0_28] : memref<8x32xf32, #tpu.memory_space<vmem>>, vector<8x32xf32>
    tpu.vector_store %arg9[%c0_27, %c0_28], %71 {strides = array<i32>} : memref<8x32xf32, #tpu.memory_space<vmem>>, vector<8x32xf32>,
    %c0_29 = arith.constant 0 : index
    %c0_30 = arith.constant 0 : index
    %75 = vector.load %arg10[%c0_29, %c0_30] : memref<8x32xf32, #tpu.memory_space<vmem>>, vector<8x32xf32>
    tpu.vector_store %arg10[%c0_29, %c0_30], %69 {strides = array<i32>} : memref<8x32xf32, #tpu.memory_space<vmem>>, vector<8x32xf32>,
    %76 = arith.index_cast %6 : i32 to index
    %c0_31 = arith.constant 0 : index
    %77 = vector.load %arg5[%76, %c0_31] : memref<32x32xf32, #tpu.memory_space<vmem>>, vector<8x32xf32>
    tpu.vector_store %arg5[%76, %c0_31], %40 {strides = array<i32>} : memref<32x32xf32, #tpu.memory_space<vmem>>, vector<8x32xf32>,
    %78 = arith.index_cast %9 : i32 to index
    %c0_32 = arith.constant 0 : index
    %79 = vector.load %arg6[%78, %c0_32] : memref<32x32xf32, #tpu.memory_space<vmem>>, vector<8x32xf32>
    tpu.vector_store %arg6[%78, %c0_32], %71 {strides = array<i32>} : memref<32x32xf32, #tpu.memory_space<vmem>>, vector<8x32xf32>,
    %c1_i32 = arith.constant 1 : i32
    %c8_i32_33 = arith.constant 8 : i32
    %80 = arith.muli %c1_i32, %c8_i32_33 : i32
    %81 = tpu.assume_multiple %80, 8 : i32
    %c3_i32_34 = arith.constant 3 : i32
    %82 = arith.subi %c3_i32_34, %c1_i32 : i32
    %c8_i32_35 = arith.constant 8 : i32
    %83 = arith.muli %82, %c8_i32_35 : i32
    %84 = tpu.assume_multiple %83, 8 : i32
    %85 = arith.index_cast %81 : i32 to index
    %c0_36 = arith.constant 0 : index
    %86 = vector.load %arg1[%85, %c0_36] : memref<32x128xf32, #tpu.memory_space<vmem>>, vector<8x128xf32>
    %c0_37 = arith.constant 0 : index
    %c0_38 = arith.constant 0 : index
    %87 = vector.load %arg7[%c0_37, %c0_38] : memref<8x32xf32, #tpu.memory_space<vmem>>, vector<8x32xf32>
    %c0_39 = arith.constant 0 : index
    %c0_40 = arith.constant 0 : index
    %88 = vector.load %arg8[%c0_39, %c0_40] : memref<8x32xf32, #tpu.memory_space<vmem>>, vector<8x32xf32>
    %cst_41 = arith.constant dense<0.000000e+00> : vector<8x128xf32>
    %89 = tpu.matmul %87, %3, %cst_41 {dimension_numbers = #tpu.dot_dimension_numbers<[1], [0], [0], [1], [0, 0, 1, 1], [], []>} : vector<8x32xf32>, vector<32x128xf32>, vector<8x128xf32> -> vector<8x128xf32>
    %90 = arith.addf %86, %89 : vector<8x128xf32>
    %91 = vector.extract_strided_slice %90 {offsets = [0, 0], sizes = [8, 32], strides = [1, 1]} : vector<8x128xf32> to vector<8x32xf32>
    %92 = arith.negf %91 : vector<8x32xf32>
    %93 = math.exp %92 : vector<8x32xf32>
    %cst_42 = arith.constant 1.000000e+00 : f32
    %94 = vector.broadcast %cst_42 : f32 to vector<8x32xf32>
    %95 = arith.addf %94, %93 : vector<8x32xf32>
    %96 = arith.divf %94, %95 : vector<8x32xf32>
    %97 = vector.extract_strided_slice %90 {offsets = [0, 32], sizes = [8, 32], strides = [1, 1]} : vector<8x128xf32> to vector<8x32xf32>
    %98 = arith.negf %97 : vector<8x32xf32>
    %99 = math.exp %98 : vector<8x32xf32>
    %cst_43 = arith.constant 1.000000e+00 : f32
    %100 = vector.broadcast %cst_43 : f32 to vector<8x32xf32>
    %101 = arith.addf %100, %99 : vector<8x32xf32>
    %102 = arith.divf %100, %101 : vector<8x32xf32>
    %103 = vector.extract_strided_slice %90 {offsets = [0, 64], sizes = [8, 32], strides = [1, 1]} : vector<8x128xf32> to vector<8x32xf32>
    %104 = math.tanh %103 : vector<8x32xf32>
    %105 = vector.extract_strided_slice %90 {offsets = [0, 96], sizes = [8, 32], strides = [1, 1]} : vector<8x128xf32> to vector<8x32xf32>
    %106 = arith.negf %105 : vector<8x32xf32>
    %107 = math.exp %106 : vector<8x32xf32>
    %cst_44 = arith.constant 1.000000e+00 : f32
    %108 = vector.broadcast %cst_44 : f32 to vector<8x32xf32>
    %109 = arith.addf %108, %107 : vector<8x32xf32>
    %110 = arith.divf %108, %109 : vector<8x32xf32>
    %111 = arith.mulf %102, %88 : vector<8x32xf32>
    %112 = arith.mulf %96, %104 : vector<8x32xf32>
    %113 = arith.addf %111, %112 : vector<8x32xf32>
    %114 = math.tanh %113 : vector<8x32xf32>
    %115 = arith.mulf %110, %114 : vector<8x32xf32>
    %116 = arith.index_cast %84 : i32 to index
    %c0_45 = arith.constant 0 : index
    %117 = vector.load %arg2[%116, %c0_45] : memref<32x128xf32, #tpu.memory_space<vmem>>, vector<8x128xf32>
    %c0_46 = arith.constant 0 : index
    %c0_47 = arith.constant 0 : index
    %118 = vector.load %arg9[%c0_46, %c0_47] : memref<8x32xf32, #tpu.memory_space<vmem>>, vector<8x32xf32>
    %c0_48 = arith.constant 0 : index
    %c0_49 = arith.constant 0 : index
    %119 = vector.load %arg10[%c0_48, %c0_49] : memref<8x32xf32, #tpu.memory_space<vmem>>, vector<8x32xf32>
    %cst_50 = arith.constant dense<0.000000e+00> : vector<8x128xf32>
    %120 = tpu.matmul %118, %4, %cst_50 {dimension_numbers = #tpu.dot_dimension_numbers<[1], [0], [0], [1], [0, 0, 1, 1], [], []>} : vector<8x32xf32>, vector<32x128xf32>, vector<8x128xf32> -> vector<8x128xf32>
    %121 = arith.addf %117, %120 : vector<8x128xf32>
    %122 = vector.extract_strided_slice %121 {offsets = [0, 0], sizes = [8, 32], strides = [1, 1]} : vector<8x128xf32> to vector<8x32xf32>
    %123 = arith.negf %122 : vector<8x32xf32>
    %124 = math.exp %123 : vector<8x32xf32>
    %cst_51 = arith.constant 1.000000e+00 : f32
    %125 = vector.broadcast %cst_51 : f32 to vector<8x32xf32>
    %126 = arith.addf %125, %124 : vector<8x32xf32>
    %127 = arith.divf %125, %126 : vector<8x32xf32>
    %128 = vector.extract_strided_slice %121 {offsets = [0, 32], sizes = [8, 32], strides = [1, 1]} : vector<8x128xf32> to vector<8x32xf32>
    %129 = arith.negf %128 : vector<8x32xf32>
    %130 = math.exp %129 : vector<8x32xf32>
    %cst_52 = arith.constant 1.000000e+00 : f32
    %131 = vector.broadcast %cst_52 : f32 to vector<8x32xf32>
    %132 = arith.addf %131, %130 : vector<8x32xf32>
    %133 = arith.divf %131, %132 : vector<8x32xf32>
    %134 = vector.extract_strided_slice %121 {offsets = [0, 64], sizes = [8, 32], strides = [1, 1]} : vector<8x128xf32> to vector<8x32xf32>
    %135 = math.tanh %134 : vector<8x32xf32>
    %136 = vector.extract_strided_slice %121 {offsets = [0, 96], sizes = [8, 32], strides = [1, 1]} : vector<8x128xf32> to vector<8x32xf32>
    %137 = arith.negf %136 : vector<8x32xf32>
    %138 = math.exp %137 : vector<8x32xf32>
    %cst_53 = arith.constant 1.000000e+00 : f32
    %139 = vector.broadcast %cst_53 : f32 to vector<8x32xf32>
    %140 = arith.addf %139, %138 : vector<8x32xf32>
    %141 = arith.divf %139, %140 : vector<8x32xf32>
    %142 = arith.mulf %133, %119 : vector<8x32xf32>
    %143 = arith.mulf %127, %135 : vector<8x32xf32>
    %144 = arith.addf %142, %143 : vector<8x32xf32>
    %145 = math.tanh %144 : vector<8x32xf32>
    %146 = arith.mulf %141, %145 : vector<8x32xf32>
    %c0_54 = arith.constant 0 : index
    %c0_55 = arith.constant 0 : index
    %147 = vector.load %arg7[%c0_54, %c0_55] : memref<8x32xf32, #tpu.memory_space<vmem>>, vector<8x32xf32>
    tpu.vector_store %arg7[%c0_54, %c0_55], %115 {strides = array<i32>} : memref<8x32xf32, #tpu.memory_space<vmem>>, vector<8x32xf32>,
    %c0_56 = arith.constant 0 : index
    %c0_57 = arith.constant 0 : index
    %148 = vector.load %arg8[%c0_56, %c0_57] : memref<8x32xf32, #tpu.memory_space<vmem>>, vector<8x32xf32>
    tpu.vector_store %arg8[%c0_56, %c0_57], %113 {strides = array<i32>} : memref<8x32xf32, #tpu.memory_space<vmem>>, vector<8x32xf32>,
    %c0_58 = arith.constant 0 : index
    %c0_59 = arith.constant 0 : index
    %149 = vector.load %arg9[%c0_58, %c0_59] : memref<8x32xf32, #tpu.memory_space<vmem>>, vector<8x32xf32>
    tpu.vector_store %arg9[%c0_58, %c0_59], %146 {strides = array<i32>} : memref<8x32xf32, #tpu.memory_space<vmem>>, vector<8x32xf32>,
    %c0_60 = arith.constant 0 : index
    %c0_61 = arith.constant 0 : index
    %150 = vector.load %arg10[%c0_60, %c0_61] : memref<8x32xf32, #tpu.memory_space<vmem>>, vector<8x32xf32>
    tpu.vector_store %arg10[%c0_60, %c0_61], %144 {strides = array<i32>} : memref<8x32xf32, #tpu.memory_space<vmem>>, vector<8x32xf32>,
    %151 = arith.index_cast %81 : i32 to index
    %c0_62 = arith.constant 0 : index
    %152 = vector.load %arg5[%151, %c0_62] : memref<32x32xf32, #tpu.memory_space<vmem>>, vector<8x32xf32>
    tpu.vector_store %arg5[%151, %c0_62], %115 {strides = array<i32>} : memref<32x32xf32, #tpu.memory_space<vmem>>, vector<8x32xf32>,
    %153 = arith.index_cast %84 : i32 to index
    %c0_63 = arith.constant 0 : index
    %154 = vector.load %arg6[%153, %c0_63] : memref<32x32xf32, #tpu.memory_space<vmem>>, vector<8x32xf32>
    tpu.vector_store %arg6[%153, %c0_63], %146 {strides = array<i32>} : memref<32x32xf32, #tpu.memory_space<vmem>>, vector<8x32xf32>,
    %c2_i32 = arith.constant 2 : i32
    %c8_i32_64 = arith.constant 8 : i32
    %155 = arith.muli %c2_i32, %c8_i32_64 : i32
    %156 = tpu.assume_multiple %155, 8 : i32
    %c3_i32_65 = arith.constant 3 : i32
    %157 = arith.subi %c3_i32_65, %c2_i32 : i32
    %c8_i32_66 = arith.constant 8 : i32
    %158 = arith.muli %157, %c8_i32_66 : i32
    %159 = tpu.assume_multiple %158, 8 : i32
    %160 = arith.index_cast %156 : i32 to index
    %c0_67 = arith.constant 0 : index
    %161 = vector.load %arg1[%160, %c0_67] : memref<32x128xf32, #tpu.memory_space<vmem>>, vector<8x128xf32>
    %c0_68 = arith.constant 0 : index
    %c0_69 = arith.constant 0 : index
    %162 = vector.load %arg7[%c0_68, %c0_69] : memref<8x32xf32, #tpu.memory_space<vmem>>, vector<8x32xf32>
    %c0_70 = arith.constant 0 : index
    %c0_71 = arith.constant 0 : index
    %163 = vector.load %arg8[%c0_70, %c0_71] : memref<8x32xf32, #tpu.memory_space<vmem>>, vector<8x32xf32>
    %cst_72 = arith.constant dense<0.000000e+00> : vector<8x128xf32>
    %164 = tpu.matmul %162, %3, %cst_72 {dimension_numbers = #tpu.dot_dimension_numbers<[1], [0], [0], [1], [0, 0, 1, 1], [], []>} : vector<8x32xf32>, vector<32x128xf32>, vector<8x128xf32> -> vector<8x128xf32>
    %165 = arith.addf %161, %164 : vector<8x128xf32>
    %166 = vector.extract_strided_slice %165 {offsets = [0, 0], sizes = [8, 32], strides = [1, 1]} : vector<8x128xf32> to vector<8x32xf32>
    %167 = arith.negf %166 : vector<8x32xf32>
    %168 = math.exp %167 : vector<8x32xf32>
    %cst_73 = arith.constant 1.000000e+00 : f32
    %169 = vector.broadcast %cst_73 : f32 to vector<8x32xf32>
    %170 = arith.addf %169, %168 : vector<8x32xf32>
    %171 = arith.divf %169, %170 : vector<8x32xf32>
    %172 = vector.extract_strided_slice %165 {offsets = [0, 32], sizes = [8, 32], strides = [1, 1]} : vector<8x128xf32> to vector<8x32xf32>
    %173 = arith.negf %172 : vector<8x32xf32>
    %174 = math.exp %173 : vector<8x32xf32>
    %cst_74 = arith.constant 1.000000e+00 : f32
    %175 = vector.broadcast %cst_74 : f32 to vector<8x32xf32>
    %176 = arith.addf %175, %174 : vector<8x32xf32>
    %177 = arith.divf %175, %176 : vector<8x32xf32>
    %178 = vector.extract_strided_slice %165 {offsets = [0, 64], sizes = [8, 32], strides = [1, 1]} : vector<8x128xf32> to vector<8x32xf32>
    %179 = math.tanh %178 : vector<8x32xf32>
    %180 = vector.extract_strided_slice %165 {offsets = [0, 96], sizes = [8, 32], strides = [1, 1]} : vector<8x128xf32> to vector<8x32xf32>
    %181 = arith.negf %180 : vector<8x32xf32>
    %182 = math.exp %181 : vector<8x32xf32>
    %cst_75 = arith.constant 1.000000e+00 : f32
    %183 = vector.broadcast %cst_75 : f32 to vector<8x32xf32>
    %184 = arith.addf %183, %182 : vector<8x32xf32>
    %185 = arith.divf %183, %184 : vector<8x32xf32>
    %186 = arith.mulf %177, %163 : vector<8x32xf32>
    %187 = arith.mulf %171, %179 : vector<8x32xf32>
    %188 = arith.addf %186, %187 : vector<8x32xf32>
    %189 = math.tanh %188 : vector<8x32xf32>
    %190 = arith.mulf %185, %189 : vector<8x32xf32>
    %191 = arith.index_cast %159 : i32 to index
    %c0_76 = arith.constant 0 : index
    %192 = vector.load %arg2[%191, %c0_76] : memref<32x128xf32, #tpu.memory_space<vmem>>, vector<8x128xf32>
    %c0_77 = arith.constant 0 : index
    %c0_78 = arith.constant 0 : index
    %193 = vector.load %arg9[%c0_77, %c0_78] : memref<8x32xf32, #tpu.memory_space<vmem>>, vector<8x32xf32>
    %c0_79 = arith.constant 0 : index
    %c0_80 = arith.constant 0 : index
    %194 = vector.load %arg10[%c0_79, %c0_80] : memref<8x32xf32, #tpu.memory_space<vmem>>, vector<8x32xf32>
    %cst_81 = arith.constant dense<0.000000e+00> : vector<8x128xf32>
    %195 = tpu.matmul %193, %4, %cst_81 {dimension_numbers = #tpu.dot_dimension_numbers<[1], [0], [0], [1], [0, 0, 1, 1], [], []>} : vector<8x32xf32>, vector<32x128xf32>, vector<8x128xf32> -> vector<8x128xf32>
    %196 = arith.addf %192, %195 : vector<8x128xf32>
    %197 = vector.extract_strided_slice %196 {offsets = [0, 0], sizes = [8, 32], strides = [1, 1]} : vector<8x128xf32> to vector<8x32xf32>
    %198 = arith.negf %197 : vector<8x32xf32>
    %199 = math.exp %198 : vector<8x32xf32>
    %cst_82 = arith.constant 1.000000e+00 : f32
    %200 = vector.broadcast %cst_82 : f32 to vector<8x32xf32>
    %201 = arith.addf %200, %199 : vector<8x32xf32>
    %202 = arith.divf %200, %201 : vector<8x32xf32>
    %203 = vector.extract_strided_slice %196 {offsets = [0, 32], sizes = [8, 32], strides = [1, 1]} : vector<8x128xf32> to vector<8x32xf32>
    %204 = arith.negf %203 : vector<8x32xf32>
    %205 = math.exp %204 : vector<8x32xf32>
    %cst_83 = arith.constant 1.000000e+00 : f32
    %206 = vector.broadcast %cst_83 : f32 to vector<8x32xf32>
    %207 = arith.addf %206, %205 : vector<8x32xf32>
    %208 = arith.divf %206, %207 : vector<8x32xf32>
    %209 = vector.extract_strided_slice %196 {offsets = [0, 64], sizes = [8, 32], strides = [1, 1]} : vector<8x128xf32> to vector<8x32xf32>
    %210 = math.tanh %209 : vector<8x32xf32>
    %211 = vector.extract_strided_slice %196 {offsets = [0, 96], sizes = [8, 32], strides = [1, 1]} : vector<8x128xf32> to vector<8x32xf32>
    %212 = arith.negf %211 : vector<8x32xf32>
    %213 = math.exp %212 : vector<8x32xf32>
    %cst_84 = arith.constant 1.000000e+00 : f32
    %214 = vector.broadcast %cst_84 : f32 to vector<8x32xf32>
    %215 = arith.addf %214, %213 : vector<8x32xf32>
    %216 = arith.divf %214, %215 : vector<8x32xf32>
    %217 = arith.mulf %208, %194 : vector<8x32xf32>
    %218 = arith.mulf %202, %210 : vector<8x32xf32>
    %219 = arith.addf %217, %218 : vector<8x32xf32>
    %220 = math.tanh %219 : vector<8x32xf32>
    %221 = arith.mulf %216, %220 : vector<8x32xf32>
    %c0_85 = arith.constant 0 : index
    %c0_86 = arith.constant 0 : index
    %222 = vector.load %arg7[%c0_85, %c0_86] : memref<8x32xf32, #tpu.memory_space<vmem>>, vector<8x32xf32>
    tpu.vector_store %arg7[%c0_85, %c0_86], %190 {strides = array<i32>} : memref<8x32xf32, #tpu.memory_space<vmem>>, vector<8x32xf32>,
    %c0_87 = arith.constant 0 : index
    %c0_88 = arith.constant 0 : index
    %223 = vector.load %arg8[%c0_87, %c0_88] : memref<8x32xf32, #tpu.memory_space<vmem>>, vector<8x32xf32>
    tpu.vector_store %arg8[%c0_87, %c0_88], %188 {strides = array<i32>} : memref<8x32xf32, #tpu.memory_space<vmem>>, vector<8x32xf32>,
    %c0_89 = arith.constant 0 : index
    %c0_90 = arith.constant 0 : index
    %224 = vector.load %arg9[%c0_89, %c0_90] : memref<8x32xf32, #tpu.memory_space<vmem>>, vector<8x32xf32>
    tpu.vector_store %arg9[%c0_89, %c0_90], %221 {strides = array<i32>} : memref<8x32xf32, #tpu.memory_space<vmem>>, vector<8x32xf32>,
    %c0_91 = arith.constant 0 : index
    %c0_92 = arith.constant 0 : index
    %225 = vector.load %arg10[%c0_91, %c0_92] : memref<8x32xf32, #tpu.memory_space<vmem>>, vector<8x32xf32>
    tpu.vector_store %arg10[%c0_91, %c0_92], %219 {strides = array<i32>} : memref<8x32xf32, #tpu.memory_space<vmem>>, vector<8x32xf32>,
    %226 = arith.index_cast %156 : i32 to index
    %c0_93 = arith.constant 0 : index
    %227 = vector.load %arg5[%226, %c0_93] : memref<32x32xf32, #tpu.memory_space<vmem>>, vector<8x32xf32>
    tpu.vector_store %arg5[%226, %c0_93], %190 {strides = array<i32>} : memref<32x32xf32, #tpu.memory_space<vmem>>, vector<8x32xf32>,
    %228 = arith.index_cast %159 : i32 to index
    %c0_94 = arith.constant 0 : index
    %229 = vector.load %arg6[%228, %c0_94] : memref<32x32xf32, #tpu.memory_space<vmem>>, vector<8x32xf32>
    tpu.vector_store %arg6[%228, %c0_94], %221 {strides = array<i32>} : memref<32x32xf32, #tpu.memory_space<vmem>>, vector<8x32xf32>,
    %c3_i32_95 = arith.constant 3 : i32
    %c8_i32_96 = arith.constant 8 : i32
    %230 = arith.muli %c3_i32_95, %c8_i32_96 : i32
    %231 = tpu.assume_multiple %230, 8 : i32
    %c3_i32_97 = arith.constant 3 : i32
    %232 = arith.subi %c3_i32_97, %c3_i32_95 : i32
    %c8_i32_98 = arith.constant 8 : i32
    %233 = arith.muli %232, %c8_i32_98 : i32
    %234 = tpu.assume_multiple %233, 8 : i32
    %235 = arith.index_cast %231 : i32 to index
    %c0_99 = arith.constant 0 : index
    %236 = vector.load %arg1[%235, %c0_99] : memref<32x128xf32, #tpu.memory_space<vmem>>, vector<8x128xf32>
    %c0_100 = arith.constant 0 : index
    %c0_101 = arith.constant 0 : index
    %237 = vector.load %arg7[%c0_100, %c0_101] : memref<8x32xf32, #tpu.memory_space<vmem>>, vector<8x32xf32>
    %c0_102 = arith.constant 0 : index
    %c0_103 = arith.constant 0 : index
    %238 = vector.load %arg8[%c0_102, %c0_103] : memref<8x32xf32, #tpu.memory_space<vmem>>, vector<8x32xf32>
    %cst_104 = arith.constant dense<0.000000e+00> : vector<8x128xf32>
    %239 = tpu.matmul %237, %3, %cst_104 {dimension_numbers = #tpu.dot_dimension_numbers<[1], [0], [0], [1], [0, 0, 1, 1], [], []>} : vector<8x32xf32>, vector<32x128xf32>, vector<8x128xf32> -> vector<8x128xf32>
    %240 = arith.addf %236, %239 : vector<8x128xf32>
    %241 = vector.extract_strided_slice %240 {offsets = [0, 0], sizes = [8, 32], strides = [1, 1]} : vector<8x128xf32> to vector<8x32xf32>
    %242 = arith.negf %241 : vector<8x32xf32>
    %243 = math.exp %242 : vector<8x32xf32>
    %cst_105 = arith.constant 1.000000e+00 : f32
    %244 = vector.broadcast %cst_105 : f32 to vector<8x32xf32>
    %245 = arith.addf %244, %243 : vector<8x32xf32>
    %246 = arith.divf %244, %245 : vector<8x32xf32>
    %247 = vector.extract_strided_slice %240 {offsets = [0, 32], sizes = [8, 32], strides = [1, 1]} : vector<8x128xf32> to vector<8x32xf32>
    %248 = arith.negf %247 : vector<8x32xf32>
    %249 = math.exp %248 : vector<8x32xf32>
    %cst_106 = arith.constant 1.000000e+00 : f32
    %250 = vector.broadcast %cst_106 : f32 to vector<8x32xf32>
    %251 = arith.addf %250, %249 : vector<8x32xf32>
    %252 = arith.divf %250, %251 : vector<8x32xf32>
    %253 = vector.extract_strided_slice %240 {offsets = [0, 64], sizes = [8, 32], strides = [1, 1]} : vector<8x128xf32> to vector<8x32xf32>
    %254 = math.tanh %253 : vector<8x32xf32>
    %255 = vector.extract_strided_slice %240 {offsets = [0, 96], sizes = [8, 32], strides = [1, 1]} : vector<8x128xf32> to vector<8x32xf32>
    %256 = arith.negf %255 : vector<8x32xf32>
    %257 = math.exp %256 : vector<8x32xf32>
    %cst_107 = arith.constant 1.000000e+00 : f32
    %258 = vector.broadcast %cst_107 : f32 to vector<8x32xf32>
    %259 = arith.addf %258, %257 : vector<8x32xf32>
    %260 = arith.divf %258, %259 : vector<8x32xf32>
    %261 = arith.mulf %252, %238 : vector<8x32xf32>
    %262 = arith.mulf %246, %254 : vector<8x32xf32>
    %263 = arith.addf %261, %262 : vector<8x32xf32>
    %264 = math.tanh %263 : vector<8x32xf32>
    %265 = arith.mulf %260, %264 : vector<8x32xf32>
    %266 = arith.index_cast %234 : i32 to index
    %c0_108 = arith.constant 0 : index
    %267 = vector.load %arg2[%266, %c0_108] : memref<32x128xf32, #tpu.memory_space<vmem>>, vector<8x128xf32>
    %c0_109 = arith.constant 0 : index
    %c0_110 = arith.constant 0 : index
    %268 = vector.load %arg9[%c0_109, %c0_110] : memref<8x32xf32, #tpu.memory_space<vmem>>, vector<8x32xf32>
    %c0_111 = arith.constant 0 : index
    %c0_112 = arith.constant 0 : index
    %269 = vector.load %arg10[%c0_111, %c0_112] : memref<8x32xf32, #tpu.memory_space<vmem>>, vector<8x32xf32>
    %cst_113 = arith.constant dense<0.000000e+00> : vector<8x128xf32>
    %270 = tpu.matmul %268, %4, %cst_113 {dimension_numbers = #tpu.dot_dimension_numbers<[1], [0], [0], [1], [0, 0, 1, 1], [], []>} : vector<8x32xf32>, vector<32x128xf32>, vector<8x128xf32> -> vector<8x128xf32>
    %271 = arith.addf %267, %270 : vector<8x128xf32>
    %272 = vector.extract_strided_slice %271 {offsets = [0, 0], sizes = [8, 32], strides = [1, 1]} : vector<8x128xf32> to vector<8x32xf32>
    %273 = arith.negf %272 : vector<8x32xf32>
    %274 = math.exp %273 : vector<8x32xf32>
    %cst_114 = arith.constant 1.000000e+00 : f32
    %275 = vector.broadcast %cst_114 : f32 to vector<8x32xf32>
    %276 = arith.addf %275, %274 : vector<8x32xf32>
    %277 = arith.divf %275, %276 : vector<8x32xf32>
    %278 = vector.extract_strided_slice %271 {offsets = [0, 32], sizes = [8, 32], strides = [1, 1]} : vector<8x128xf32> to vector<8x32xf32>
    %279 = arith.negf %278 : vector<8x32xf32>
    %280 = math.exp %279 : vector<8x32xf32>
    %cst_115 = arith.constant 1.000000e+00 : f32
    %281 = vector.broadcast %cst_115 : f32 to vector<8x32xf32>
    %282 = arith.addf %281, %280 : vector<8x32xf32>
    %283 = arith.divf %281, %282 : vector<8x32xf32>
    %284 = vector.extract_strided_slice %271 {offsets = [0, 64], sizes = [8, 32], strides = [1, 1]} : vector<8x128xf32> to vector<8x32xf32>
    %285 = math.tanh %284 : vector<8x32xf32>
    %286 = vector.extract_strided_slice %271 {offsets = [0, 96], sizes = [8, 32], strides = [1, 1]} : vector<8x128xf32> to vector<8x32xf32>
    %287 = arith.negf %286 : vector<8x32xf32>
    %288 = math.exp %287 : vector<8x32xf32>
    %cst_116 = arith.constant 1.000000e+00 : f32
    %289 = vector.broadcast %cst_116 : f32 to vector<8x32xf32>
    %290 = arith.addf %289, %288 : vector<8x32xf32>
    %291 = arith.divf %289, %290 : vector<8x32xf32>
    %292 = arith.mulf %283, %269 : vector<8x32xf32>
    %293 = arith.mulf %277, %285 : vector<8x32xf32>
    %294 = arith.addf %292, %293 : vector<8x32xf32>
    %295 = math.tanh %294 : vector<8x32xf32>
    %296 = arith.mulf %291, %295 : vector<8x32xf32>
    %c0_117 = arith.constant 0 : index
    %c0_118 = arith.constant 0 : index
    %297 = vector.load %arg7[%c0_117, %c0_118] : memref<8x32xf32, #tpu.memory_space<vmem>>, vector<8x32xf32>
    tpu.vector_store %arg7[%c0_117, %c0_118], %265 {strides = array<i32>} : memref<8x32xf32, #tpu.memory_space<vmem>>, vector<8x32xf32>,
    %c0_119 = arith.constant 0 : index
    %c0_120 = arith.constant 0 : index
    %298 = vector.load %arg8[%c0_119, %c0_120] : memref<8x32xf32, #tpu.memory_space<vmem>>, vector<8x32xf32>
    tpu.vector_store %arg8[%c0_119, %c0_120], %263 {strides = array<i32>} : memref<8x32xf32, #tpu.memory_space<vmem>>, vector<8x32xf32>,
    %c0_121 = arith.constant 0 : index
    %c0_122 = arith.constant 0 : index
    %299 = vector.load %arg9[%c0_121, %c0_122] : memref<8x32xf32, #tpu.memory_space<vmem>>, vector<8x32xf32>
    tpu.vector_store %arg9[%c0_121, %c0_122], %296 {strides = array<i32>} : memref<8x32xf32, #tpu.memory_space<vmem>>, vector<8x32xf32>,
    %c0_123 = arith.constant 0 : index
    %c0_124 = arith.constant 0 : index
    %300 = vector.load %arg10[%c0_123, %c0_124] : memref<8x32xf32, #tpu.memory_space<vmem>>, vector<8x32xf32>
    tpu.vector_store %arg10[%c0_123, %c0_124], %294 {strides = array<i32>} : memref<8x32xf32, #tpu.memory_space<vmem>>, vector<8x32xf32>,
    %301 = arith.index_cast %231 : i32 to index
    %c0_125 = arith.constant 0 : index
    %302 = vector.load %arg5[%301, %c0_125] : memref<32x32xf32, #tpu.memory_space<vmem>>, vector<8x32xf32>
    tpu.vector_store %arg5[%301, %c0_125], %265 {strides = array<i32>} : memref<32x32xf32, #tpu.memory_space<vmem>>, vector<8x32xf32>,
    %303 = arith.index_cast %234 : i32 to index
    %c0_126 = arith.constant 0 : index
    %304 = vector.load %arg6[%303, %c0_126] : memref<32x32xf32, #tpu.memory_space<vmem>>, vector<8x32xf32>
    tpu.vector_store %arg6[%303, %c0_126], %296 {strides = array<i32>} : memref<32x32xf32, #tpu.memory_space<vmem>>, vector<8x32xf32>,
    %c4_i32 = arith.constant 4 : i32
    return
  }
  func.func @transform_0(%arg0: i32) -> (i32, i32) {
    %c0_i32 = arith.constant 0 : i32
    %c0_i32_0 = arith.constant 0 : i32
    return %arg0, %c0_i32 : i32, i32
  }
  func.func @transform_1(%arg0: i32) -> (i32, i32) {
    %c1_i32 = arith.constant 1 : i32
    %0 = arith.subi %c1_i32, %arg0 : i32
    %c0_i32 = arith.constant 0 : i32
    %c0_i32_0 = arith.constant 0 : i32
    return %0, %c0_i32 : i32, i32
  }
  func.func @transform_2(%arg0: i32) -> (i32, i32) {
    %c0_i32 = arith.constant 0 : i32
    %c0_i32_0 = arith.constant 0 : i32
    %c0_i32_1 = arith.constant 0 : i32
    return %c0_i32, %c0_i32_0 : i32, i32
  }
  func.func @transform_3(%arg0: i32) -> (i32, i32) {
    %c0_i32 = arith.constant 0 : i32
    %c0_i32_0 = arith.constant 0 : i32
    %c0_i32_1 = arith.constant 0 : i32
    return %c0_i32, %c0_i32_0 : i32, i32
  }
  func.func @transform_4(%arg0: i32) -> (i32, i32) {
    %c0_i32 = arith.constant 0 : i32
    %c0_i32_0 = arith.constant 0 : i32
    return %arg0, %c0_i32 : i32, i32
  }
  func.func @transform_5(%arg0: i32) -> (i32, i32) {
    %c1_i32 = arith.constant 1 : i32
    %0 = arith.subi %c1_i32, %arg0 : i32
    %c0_i32 = arith.constant 0 : i32
    %c0_i32_0 = arith.constant 0 : i32
    return %0, %c0_i32 : i32, i32
  }
}

module attributes {stable_mosaic.version = 11 : i64} {
  func.func @_proj_next_kernel(%arg0: i32, %arg1: memref<64x32xf32, #tpu.memory_space<vmem>>, %arg2: memref<64x32xf32, #tpu.memory_space<vmem>>, %arg3: memref<32x256xf32, #tpu.memory_space<vmem>>, %arg4: memref<32x256xf32, #tpu.memory_space<vmem>>, %arg5: memref<1x256xf32, #tpu.memory_space<vmem>>, %arg6: memref<64x128xf32, #tpu.memory_space<vmem>>, %arg7: memref<64x128xf32, #tpu.memory_space<vmem>>) attributes {dimension_semantics = [#tpu.dimension_semantics<parallel>], iteration_bounds = array<i64: 1>, scalar_prefetch = 0 : i64, scratch_operands = 0 : i64, tpu.core_type = #tpu.core_type<tc>, window_params = [{transform_indices = @transform_0, window_bounds = array<i64: 64, 32>}, {transform_indices = @transform_1, window_bounds = array<i64: 64, 32>}, {pipeline_mode = #tpu.pipeline_mode<synchronous>, transform_indices = @transform_2, window_bounds = array<i64: 32, 256>}, {pipeline_mode = #tpu.pipeline_mode<synchronous>, transform_indices = @transform_3, window_bounds = array<i64: 32, 256>}, {pipeline_mode = #tpu.pipeline_mode<synchronous>, transform_indices = @transform_4, window_bounds = array<i64: 1, 256>}, {transform_indices = @transform_5, window_bounds = array<i64: 64, 128>}, {transform_indices = @transform_6, window_bounds = array<i64: 64, 128>}]} {
    %c0 = arith.constant 0 : index
    %c0_0 = arith.constant 0 : index
    %0 = vector.load %arg1[%c0, %c0_0] : memref<64x32xf32, #tpu.memory_space<vmem>>, vector<64x32xf32>
    %c0_1 = arith.constant 0 : index
    %c0_2 = arith.constant 0 : index
    %1 = vector.load %arg3[%c0_1, %c0_2] : memref<32x256xf32, #tpu.memory_space<vmem>>, vector<32x256xf32>
    %cst = arith.constant dense<0.000000e+00> : vector<64x256xf32>
    %2 = tpu.matmul %0, %1, %cst {dimension_numbers = #tpu.dot_dimension_numbers<[1], [0], [0], [1], [0, 0, 1, 1], [], []>} : vector<64x32xf32>, vector<32x256xf32>, vector<64x256xf32> -> vector<64x256xf32>
    %c0_3 = arith.constant 0 : index
    %c0_4 = arith.constant 0 : index
    %3 = vector.load %arg2[%c0_3, %c0_4] : memref<64x32xf32, #tpu.memory_space<vmem>>, vector<64x32xf32>
    %c0_5 = arith.constant 0 : index
    %c0_6 = arith.constant 0 : index
    %4 = vector.load %arg4[%c0_5, %c0_6] : memref<32x256xf32, #tpu.memory_space<vmem>>, vector<32x256xf32>
    %cst_7 = arith.constant dense<0.000000e+00> : vector<64x256xf32>
    %5 = tpu.matmul %3, %4, %cst_7 {dimension_numbers = #tpu.dot_dimension_numbers<[1], [0], [0], [1], [0, 0, 1, 1], [], []>} : vector<64x32xf32>, vector<32x256xf32>, vector<64x256xf32> -> vector<64x256xf32>
    %6 = arith.addf %2, %5 : vector<64x256xf32>
    %c0_8 = arith.constant 0 : index
    %c0_9 = arith.constant 0 : index
    %7 = vector.load %arg5[%c0_8, %c0_9] : memref<1x256xf32, #tpu.memory_space<vmem>>, vector<1x256xf32>
    %8 = vector.broadcast %7 : vector<1x256xf32> to vector<64x256xf32>
    %9 = arith.addf %6, %8 : vector<64x256xf32>
    %10 = vector.extract_strided_slice %9 {offsets = [0, 0], sizes = [64, 128], strides = [1, 1]} : vector<64x256xf32> to vector<64x128xf32>
    %c0_10 = arith.constant 0 : index
    %c0_11 = arith.constant 0 : index
    %11 = vector.load %arg6[%c0_10, %c0_11] : memref<64x128xf32, #tpu.memory_space<vmem>>, vector<64x128xf32>
    tpu.vector_store %arg6[%c0_10, %c0_11], %10 {strides = array<i32>} : memref<64x128xf32, #tpu.memory_space<vmem>>, vector<64x128xf32>,
    %12 = vector.extract_strided_slice %9 {offsets = [0, 128], sizes = [64, 128], strides = [1, 1]} : vector<64x256xf32> to vector<64x128xf32>
    %c0_12 = arith.constant 0 : index
    %c0_13 = arith.constant 0 : index
    %13 = vector.load %arg7[%c0_12, %c0_13] : memref<64x128xf32, #tpu.memory_space<vmem>>, vector<64x128xf32>
    tpu.vector_store %arg7[%c0_12, %c0_13], %12 {strides = array<i32>} : memref<64x128xf32, #tpu.memory_space<vmem>>, vector<64x128xf32>,
    return
  }
  func.func @transform_0(%arg0: i32) -> (i32, i32) {
    %c0_i32 = arith.constant 0 : i32
    %c0_i32_0 = arith.constant 0 : i32
    return %arg0, %c0_i32 : i32, i32
  }
  func.func @transform_1(%arg0: i32) -> (i32, i32) {
    %c0_i32 = arith.constant 0 : i32
    %c0_i32_0 = arith.constant 0 : i32
    return %arg0, %c0_i32 : i32, i32
  }
  func.func @transform_2(%arg0: i32) -> (i32, i32) {
    %c0_i32 = arith.constant 0 : i32
    %c0_i32_0 = arith.constant 0 : i32
    %c0_i32_1 = arith.constant 0 : i32
    return %c0_i32, %c0_i32_0 : i32, i32
  }
  func.func @transform_3(%arg0: i32) -> (i32, i32) {
    %c0_i32 = arith.constant 0 : i32
    %c0_i32_0 = arith.constant 0 : i32
    %c0_i32_1 = arith.constant 0 : i32
    return %c0_i32, %c0_i32_0 : i32, i32
  }
  func.func @transform_4(%arg0: i32) -> (i32, i32) {
    %c0_i32 = arith.constant 0 : i32
    %c0_i32_0 = arith.constant 0 : i32
    %c0_i32_1 = arith.constant 0 : i32
    return %c0_i32, %c0_i32_0 : i32, i32
  }
  func.func @transform_5(%arg0: i32) -> (i32, i32) {
    %c0_i32 = arith.constant 0 : i32
    %c0_i32_0 = arith.constant 0 : i32
    return %arg0, %c0_i32 : i32, i32
  }
  func.func @transform_6(%arg0: i32) -> (i32, i32) {
    %c0_i32 = arith.constant 0 : i32
    %c0_i32_0 = arith.constant 0 : i32
    return %arg0, %c0_i32 : i32, i32
  }
}

module attributes {stable_mosaic.version = 11 : i64} {
  func.func @_bilstm_last_kernel(%arg0: i32, %arg1: memref<32x128xf32, #tpu.memory_space<vmem>>, %arg2: memref<8x128xf32, #tpu.memory_space<vmem>>, %arg3: memref<32x128xf32, #tpu.memory_space<vmem>>, %arg4: memref<8x64xf32, #tpu.memory_space<vmem>>, %arg5: memref<8x32xf32, #tpu.memory_space<vmem>>, %arg6: memref<8x32xf32, #tpu.memory_space<vmem>>) attributes {dimension_semantics = [#tpu.dimension_semantics<arbitrary>], iteration_bounds = array<i64: 2>, scalar_prefetch = 0 : i64, scratch_operands = 2 : i64, tpu.core_type = #tpu.core_type<tc>, window_params = [{transform_indices = @transform_0, window_bounds = array<i64: 32, 128>}, {pipeline_mode = #tpu.pipeline_mode<synchronous>, transform_indices = @transform_1, window_bounds = array<i64: 8, 128>}, {pipeline_mode = #tpu.pipeline_mode<synchronous>, transform_indices = @transform_2, window_bounds = array<i64: 32, 128>}, {pipeline_mode = #tpu.pipeline_mode<synchronous>, transform_indices = @transform_3, window_bounds = array<i64: 8, 64>}]} {
    %c0_i32 = arith.constant 0 : i32
    %0 = arith.cmpi eq, %arg0, %c0_i32 : i32
    %1 = arith.extui %0 : i1 to i32
    %c0_i32_0 = arith.constant 0 : i32
    %2 = arith.cmpi ne, %1, %c0_i32_0 : i32
    scf.if %2 {
      %cst_59 = arith.constant 0.000000e+00 : f32
      %147 = vector.broadcast %cst_59 : f32 to vector<8x32xf32>
      %c0_60 = arith.constant 0 : index
      %c0_61 = arith.constant 0 : index
      %148 = vector.load %arg5[%c0_60, %c0_61] : memref<8x32xf32, #tpu.memory_space<vmem>>, vector<8x32xf32>
      tpu.vector_store %arg5[%c0_60, %c0_61], %147 {strides = array<i32>} : memref<8x32xf32, #tpu.memory_space<vmem>>, vector<8x32xf32>,
      %cst_62 = arith.constant 0.000000e+00 : f32
      %149 = vector.broadcast %cst_62 : f32 to vector<8x32xf32>
      %c0_63 = arith.constant 0 : index
      %c0_64 = arith.constant 0 : index
      %150 = vector.load %arg6[%c0_63, %c0_64] : memref<8x32xf32, #tpu.memory_space<vmem>>, vector<8x32xf32>
      tpu.vector_store %arg6[%c0_63, %c0_64], %149 {strides = array<i32>} : memref<8x32xf32, #tpu.memory_space<vmem>>, vector<8x32xf32>,
    } else {
    }
    %c0 = arith.constant 0 : index
    %c0_1 = arith.constant 0 : index
    %3 = vector.load %arg3[%c0, %c0_1] : memref<32x128xf32, #tpu.memory_space<vmem>>, vector<32x128xf32>
    %c0_i32_2 = arith.constant 0 : i32
    %c8_i32 = arith.constant 8 : i32
    %4 = arith.muli %c0_i32_2, %c8_i32 : i32
    %5 = tpu.assume_multiple %4, 8 : i32
    %6 = arith.index_cast %5 : i32 to index
    %c0_3 = arith.constant 0 : index
    %7 = vector.load %arg1[%6, %c0_3] : memref<32x128xf32, #tpu.memory_space<vmem>>, vector<8x128xf32>
    %c0_4 = arith.constant 0 : index
    %c0_5 = arith.constant 0 : index
    %8 = vector.load %arg5[%c0_4, %c0_5] : memref<8x32xf32, #tpu.memory_space<vmem>>, vector<8x32xf32>
    %c0_6 = arith.constant 0 : index
    %c0_7 = arith.constant 0 : index
    %9 = vector.load %arg6[%c0_6, %c0_7] : memref<8x32xf32, #tpu.memory_space<vmem>>, vector<8x32xf32>
    %cst = arith.constant dense<0.000000e+00> : vector<8x128xf32>
    %10 = tpu.matmul %8, %3, %cst {dimension_numbers = #tpu.dot_dimension_numbers<[1], [0], [0], [1], [0, 0, 1, 1], [], []>} : vector<8x32xf32>, vector<32x128xf32>, vector<8x128xf32> -> vector<8x128xf32>
    %11 = arith.addf %7, %10 : vector<8x128xf32>
    %12 = vector.extract_strided_slice %11 {offsets = [0, 0], sizes = [8, 32], strides = [1, 1]} : vector<8x128xf32> to vector<8x32xf32>
    %13 = arith.negf %12 : vector<8x32xf32>
    %14 = math.exp %13 : vector<8x32xf32>
    %cst_8 = arith.constant 1.000000e+00 : f32
    %15 = vector.broadcast %cst_8 : f32 to vector<8x32xf32>
    %16 = arith.addf %15, %14 : vector<8x32xf32>
    %17 = arith.divf %15, %16 : vector<8x32xf32>
    %18 = vector.extract_strided_slice %11 {offsets = [0, 32], sizes = [8, 32], strides = [1, 1]} : vector<8x128xf32> to vector<8x32xf32>
    %19 = arith.negf %18 : vector<8x32xf32>
    %20 = math.exp %19 : vector<8x32xf32>
    %cst_9 = arith.constant 1.000000e+00 : f32
    %21 = vector.broadcast %cst_9 : f32 to vector<8x32xf32>
    %22 = arith.addf %21, %20 : vector<8x32xf32>
    %23 = arith.divf %21, %22 : vector<8x32xf32>
    %24 = vector.extract_strided_slice %11 {offsets = [0, 64], sizes = [8, 32], strides = [1, 1]} : vector<8x128xf32> to vector<8x32xf32>
    %25 = math.tanh %24 : vector<8x32xf32>
    %26 = vector.extract_strided_slice %11 {offsets = [0, 96], sizes = [8, 32], strides = [1, 1]} : vector<8x128xf32> to vector<8x32xf32>
    %27 = arith.negf %26 : vector<8x32xf32>
    %28 = math.exp %27 : vector<8x32xf32>
    %cst_10 = arith.constant 1.000000e+00 : f32
    %29 = vector.broadcast %cst_10 : f32 to vector<8x32xf32>
    %30 = arith.addf %29, %28 : vector<8x32xf32>
    %31 = arith.divf %29, %30 : vector<8x32xf32>
    %32 = arith.mulf %23, %9 : vector<8x32xf32>
    %33 = arith.mulf %17, %25 : vector<8x32xf32>
    %34 = arith.addf %32, %33 : vector<8x32xf32>
    %35 = math.tanh %34 : vector<8x32xf32>
    %36 = arith.mulf %31, %35 : vector<8x32xf32>
    %c0_11 = arith.constant 0 : index
    %c0_12 = arith.constant 0 : index
    %37 = vector.load %arg5[%c0_11, %c0_12] : memref<8x32xf32, #tpu.memory_space<vmem>>, vector<8x32xf32>
    tpu.vector_store %arg5[%c0_11, %c0_12], %36 {strides = array<i32>} : memref<8x32xf32, #tpu.memory_space<vmem>>, vector<8x32xf32>,
    %c0_13 = arith.constant 0 : index
    %c0_14 = arith.constant 0 : index
    %38 = vector.load %arg6[%c0_13, %c0_14] : memref<8x32xf32, #tpu.memory_space<vmem>>, vector<8x32xf32>
    tpu.vector_store %arg6[%c0_13, %c0_14], %34 {strides = array<i32>} : memref<8x32xf32, #tpu.memory_space<vmem>>, vector<8x32xf32>,
    %c1_i32 = arith.constant 1 : i32
    %c8_i32_15 = arith.constant 8 : i32
    %39 = arith.muli %c1_i32, %c8_i32_15 : i32
    %40 = tpu.assume_multiple %39, 8 : i32
    %41 = arith.index_cast %40 : i32 to index
    %c0_16 = arith.constant 0 : index
    %42 = vector.load %arg1[%41, %c0_16] : memref<32x128xf32, #tpu.memory_space<vmem>>, vector<8x128xf32>
    %c0_17 = arith.constant 0 : index
    %c0_18 = arith.constant 0 : index
    %43 = vector.load %arg5[%c0_17, %c0_18] : memref<8x32xf32, #tpu.memory_space<vmem>>, vector<8x32xf32>
    %c0_19 = arith.constant 0 : index
    %c0_20 = arith.constant 0 : index
    %44 = vector.load %arg6[%c0_19, %c0_20] : memref<8x32xf32, #tpu.memory_space<vmem>>, vector<8x32xf32>
    %cst_21 = arith.constant dense<0.000000e+00> : vector<8x128xf32>
    %45 = tpu.matmul %43, %3, %cst_21 {dimension_numbers = #tpu.dot_dimension_numbers<[1], [0], [0], [1], [0, 0, 1, 1], [], []>} : vector<8x32xf32>, vector<32x128xf32>, vector<8x128xf32> -> vector<8x128xf32>
    %46 = arith.addf %42, %45 : vector<8x128xf32>
    %47 = vector.extract_strided_slice %46 {offsets = [0, 0], sizes = [8, 32], strides = [1, 1]} : vector<8x128xf32> to vector<8x32xf32>
    %48 = arith.negf %47 : vector<8x32xf32>
    %49 = math.exp %48 : vector<8x32xf32>
    %cst_22 = arith.constant 1.000000e+00 : f32
    %50 = vector.broadcast %cst_22 : f32 to vector<8x32xf32>
    %51 = arith.addf %50, %49 : vector<8x32xf32>
    %52 = arith.divf %50, %51 : vector<8x32xf32>
    %53 = vector.extract_strided_slice %46 {offsets = [0, 32], sizes = [8, 32], strides = [1, 1]} : vector<8x128xf32> to vector<8x32xf32>
    %54 = arith.negf %53 : vector<8x32xf32>
    %55 = math.exp %54 : vector<8x32xf32>
    %cst_23 = arith.constant 1.000000e+00 : f32
    %56 = vector.broadcast %cst_23 : f32 to vector<8x32xf32>
    %57 = arith.addf %56, %55 : vector<8x32xf32>
    %58 = arith.divf %56, %57 : vector<8x32xf32>
    %59 = vector.extract_strided_slice %46 {offsets = [0, 64], sizes = [8, 32], strides = [1, 1]} : vector<8x128xf32> to vector<8x32xf32>
    %60 = math.tanh %59 : vector<8x32xf32>
    %61 = vector.extract_strided_slice %46 {offsets = [0, 96], sizes = [8, 32], strides = [1, 1]} : vector<8x128xf32> to vector<8x32xf32>
    %62 = arith.negf %61 : vector<8x32xf32>
    %63 = math.exp %62 : vector<8x32xf32>
    %cst_24 = arith.constant 1.000000e+00 : f32
    %64 = vector.broadcast %cst_24 : f32 to vector<8x32xf32>
    %65 = arith.addf %64, %63 : vector<8x32xf32>
    %66 = arith.divf %64, %65 : vector<8x32xf32>
    %67 = arith.mulf %58, %44 : vector<8x32xf32>
    %68 = arith.mulf %52, %60 : vector<8x32xf32>
    %69 = arith.addf %67, %68 : vector<8x32xf32>
    %70 = math.tanh %69 : vector<8x32xf32>
    %71 = arith.mulf %66, %70 : vector<8x32xf32>
    %c0_25 = arith.constant 0 : index
    %c0_26 = arith.constant 0 : index
    %72 = vector.load %arg5[%c0_25, %c0_26] : memref<8x32xf32, #tpu.memory_space<vmem>>, vector<8x32xf32>
    tpu.vector_store %arg5[%c0_25, %c0_26], %71 {strides = array<i32>} : memref<8x32xf32, #tpu.memory_space<vmem>>, vector<8x32xf32>,
    %c0_27 = arith.constant 0 : index
    %c0_28 = arith.constant 0 : index
    %73 = vector.load %arg6[%c0_27, %c0_28] : memref<8x32xf32, #tpu.memory_space<vmem>>, vector<8x32xf32>
    tpu.vector_store %arg6[%c0_27, %c0_28], %69 {strides = array<i32>} : memref<8x32xf32, #tpu.memory_space<vmem>>, vector<8x32xf32>,
    %c2_i32 = arith.constant 2 : i32
    %c8_i32_29 = arith.constant 8 : i32
    %74 = arith.muli %c2_i32, %c8_i32_29 : i32
    %75 = tpu.assume_multiple %74, 8 : i32
    %76 = arith.index_cast %75 : i32 to index
    %c0_30 = arith.constant 0 : index
    %77 = vector.load %arg1[%76, %c0_30] : memref<32x128xf32, #tpu.memory_space<vmem>>, vector<8x128xf32>
    %c0_31 = arith.constant 0 : index
    %c0_32 = arith.constant 0 : index
    %78 = vector.load %arg5[%c0_31, %c0_32] : memref<8x32xf32, #tpu.memory_space<vmem>>, vector<8x32xf32>
    %c0_33 = arith.constant 0 : index
    %c0_34 = arith.constant 0 : index
    %79 = vector.load %arg6[%c0_33, %c0_34] : memref<8x32xf32, #tpu.memory_space<vmem>>, vector<8x32xf32>
    %cst_35 = arith.constant dense<0.000000e+00> : vector<8x128xf32>
    %80 = tpu.matmul %78, %3, %cst_35 {dimension_numbers = #tpu.dot_dimension_numbers<[1], [0], [0], [1], [0, 0, 1, 1], [], []>} : vector<8x32xf32>, vector<32x128xf32>, vector<8x128xf32> -> vector<8x128xf32>
    %81 = arith.addf %77, %80 : vector<8x128xf32>
    %82 = vector.extract_strided_slice %81 {offsets = [0, 0], sizes = [8, 32], strides = [1, 1]} : vector<8x128xf32> to vector<8x32xf32>
    %83 = arith.negf %82 : vector<8x32xf32>
    %84 = math.exp %83 : vector<8x32xf32>
    %cst_36 = arith.constant 1.000000e+00 : f32
    %85 = vector.broadcast %cst_36 : f32 to vector<8x32xf32>
    %86 = arith.addf %85, %84 : vector<8x32xf32>
    %87 = arith.divf %85, %86 : vector<8x32xf32>
    %88 = vector.extract_strided_slice %81 {offsets = [0, 32], sizes = [8, 32], strides = [1, 1]} : vector<8x128xf32> to vector<8x32xf32>
    %89 = arith.negf %88 : vector<8x32xf32>
    %90 = math.exp %89 : vector<8x32xf32>
    %cst_37 = arith.constant 1.000000e+00 : f32
    %91 = vector.broadcast %cst_37 : f32 to vector<8x32xf32>
    %92 = arith.addf %91, %90 : vector<8x32xf32>
    %93 = arith.divf %91, %92 : vector<8x32xf32>
    %94 = vector.extract_strided_slice %81 {offsets = [0, 64], sizes = [8, 32], strides = [1, 1]} : vector<8x128xf32> to vector<8x32xf32>
    %95 = math.tanh %94 : vector<8x32xf32>
    %96 = vector.extract_strided_slice %81 {offsets = [0, 96], sizes = [8, 32], strides = [1, 1]} : vector<8x128xf32> to vector<8x32xf32>
    %97 = arith.negf %96 : vector<8x32xf32>
    %98 = math.exp %97 : vector<8x32xf32>
    %cst_38 = arith.constant 1.000000e+00 : f32
    %99 = vector.broadcast %cst_38 : f32 to vector<8x32xf32>
    %100 = arith.addf %99, %98 : vector<8x32xf32>
    %101 = arith.divf %99, %100 : vector<8x32xf32>
    %102 = arith.mulf %93, %79 : vector<8x32xf32>
    %103 = arith.mulf %87, %95 : vector<8x32xf32>
    %104 = arith.addf %102, %103 : vector<8x32xf32>
    %105 = math.tanh %104 : vector<8x32xf32>
    %106 = arith.mulf %101, %105 : vector<8x32xf32>
    %c0_39 = arith.constant 0 : index
    %c0_40 = arith.constant 0 : index
    %107 = vector.load %arg5[%c0_39, %c0_40] : memref<8x32xf32, #tpu.memory_space<vmem>>, vector<8x32xf32>
    tpu.vector_store %arg5[%c0_39, %c0_40], %106 {strides = array<i32>} : memref<8x32xf32, #tpu.memory_space<vmem>>, vector<8x32xf32>,
    %c0_41 = arith.constant 0 : index
    %c0_42 = arith.constant 0 : index
    %108 = vector.load %arg6[%c0_41, %c0_42] : memref<8x32xf32, #tpu.memory_space<vmem>>, vector<8x32xf32>
    tpu.vector_store %arg6[%c0_41, %c0_42], %104 {strides = array<i32>} : memref<8x32xf32, #tpu.memory_space<vmem>>, vector<8x32xf32>,
    %c3_i32 = arith.constant 3 : i32
    %c8_i32_43 = arith.constant 8 : i32
    %109 = arith.muli %c3_i32, %c8_i32_43 : i32
    %110 = tpu.assume_multiple %109, 8 : i32
    %111 = arith.index_cast %110 : i32 to index
    %c0_44 = arith.constant 0 : index
    %112 = vector.load %arg1[%111, %c0_44] : memref<32x128xf32, #tpu.memory_space<vmem>>, vector<8x128xf32>
    %c0_45 = arith.constant 0 : index
    %c0_46 = arith.constant 0 : index
    %113 = vector.load %arg5[%c0_45, %c0_46] : memref<8x32xf32, #tpu.memory_space<vmem>>, vector<8x32xf32>
    %c0_47 = arith.constant 0 : index
    %c0_48 = arith.constant 0 : index
    %114 = vector.load %arg6[%c0_47, %c0_48] : memref<8x32xf32, #tpu.memory_space<vmem>>, vector<8x32xf32>
    %cst_49 = arith.constant dense<0.000000e+00> : vector<8x128xf32>
    %115 = tpu.matmul %113, %3, %cst_49 {dimension_numbers = #tpu.dot_dimension_numbers<[1], [0], [0], [1], [0, 0, 1, 1], [], []>} : vector<8x32xf32>, vector<32x128xf32>, vector<8x128xf32> -> vector<8x128xf32>
    %116 = arith.addf %112, %115 : vector<8x128xf32>
    %117 = vector.extract_strided_slice %116 {offsets = [0, 0], sizes = [8, 32], strides = [1, 1]} : vector<8x128xf32> to vector<8x32xf32>
    %118 = arith.negf %117 : vector<8x32xf32>
    %119 = math.exp %118 : vector<8x32xf32>
    %cst_50 = arith.constant 1.000000e+00 : f32
    %120 = vector.broadcast %cst_50 : f32 to vector<8x32xf32>
    %121 = arith.addf %120, %119 : vector<8x32xf32>
    %122 = arith.divf %120, %121 : vector<8x32xf32>
    %123 = vector.extract_strided_slice %116 {offsets = [0, 32], sizes = [8, 32], strides = [1, 1]} : vector<8x128xf32> to vector<8x32xf32>
    %124 = arith.negf %123 : vector<8x32xf32>
    %125 = math.exp %124 : vector<8x32xf32>
    %cst_51 = arith.constant 1.000000e+00 : f32
    %126 = vector.broadcast %cst_51 : f32 to vector<8x32xf32>
    %127 = arith.addf %126, %125 : vector<8x32xf32>
    %128 = arith.divf %126, %127 : vector<8x32xf32>
    %129 = vector.extract_strided_slice %116 {offsets = [0, 64], sizes = [8, 32], strides = [1, 1]} : vector<8x128xf32> to vector<8x32xf32>
    %130 = math.tanh %129 : vector<8x32xf32>
    %131 = vector.extract_strided_slice %116 {offsets = [0, 96], sizes = [8, 32], strides = [1, 1]} : vector<8x128xf32> to vector<8x32xf32>
    %132 = arith.negf %131 : vector<8x32xf32>
    %133 = math.exp %132 : vector<8x32xf32>
    %cst_52 = arith.constant 1.000000e+00 : f32
    %134 = vector.broadcast %cst_52 : f32 to vector<8x32xf32>
    %135 = arith.addf %134, %133 : vector<8x32xf32>
    %136 = arith.divf %134, %135 : vector<8x32xf32>
    %137 = arith.mulf %128, %114 : vector<8x32xf32>
    %138 = arith.mulf %122, %130 : vector<8x32xf32>
    %139 = arith.addf %137, %138 : vector<8x32xf32>
    %140 = math.tanh %139 : vector<8x32xf32>
    %141 = arith.mulf %136, %140 : vector<8x32xf32>
    %c0_53 = arith.constant 0 : index
    %c0_54 = arith.constant 0 : index
    %142 = vector.load %arg5[%c0_53, %c0_54] : memref<8x32xf32, #tpu.memory_space<vmem>>, vector<8x32xf32>
    tpu.vector_store %arg5[%c0_53, %c0_54], %141 {strides = array<i32>} : memref<8x32xf32, #tpu.memory_space<vmem>>, vector<8x32xf32>,
    %c0_55 = arith.constant 0 : index
    %c0_56 = arith.constant 0 : index
    %143 = vector.load %arg6[%c0_55, %c0_56] : memref<8x32xf32, #tpu.memory_space<vmem>>, vector<8x32xf32>
    tpu.vector_store %arg6[%c0_55, %c0_56], %139 {strides = array<i32>} : memref<8x32xf32, #tpu.memory_space<vmem>>, vector<8x32xf32>,
    %c4_i32 = arith.constant 4 : i32
    %c1_i32_57 = arith.constant 1 : i32
    %144 = arith.cmpi eq, %arg0, %c1_i32_57 : i32
    %145 = arith.extui %144 : i1 to i32
    %c0_i32_58 = arith.constant 0 : i32
    %146 = arith.cmpi ne, %145, %c0_i32_58 : i32
    scf.if %146 {
      %c0_59 = arith.constant 0 : index
      %c0_60 = arith.constant 0 : index
      %147 = vector.load %arg5[%c0_59, %c0_60] : memref<8x32xf32, #tpu.memory_space<vmem>>, vector<8x32xf32>
      %c0_61 = arith.constant 0 : index
      %c0_62 = arith.constant 0 : index
      %148 = vector.load %arg4[%c0_61, %c0_62] : memref<8x64xf32, #tpu.memory_space<vmem>>, vector<8x32xf32>
      tpu.vector_store %arg4[%c0_61, %c0_62], %147 {strides = array<i32>} : memref<8x64xf32, #tpu.memory_space<vmem>>, vector<8x32xf32>,
      %c0_63 = arith.constant 0 : index
      %c0_64 = arith.constant 0 : index
      %149 = vector.load %arg2[%c0_63, %c0_64] : memref<8x128xf32, #tpu.memory_space<vmem>>, vector<8x128xf32>
      %150 = vector.extract_strided_slice %149 {offsets = [0, 0], sizes = [8, 32], strides = [1, 1]} : vector<8x128xf32> to vector<8x32xf32>
      %151 = arith.negf %150 : vector<8x32xf32>
      %152 = math.exp %151 : vector<8x32xf32>
      %cst_65 = arith.constant 1.000000e+00 : f32
      %153 = vector.broadcast %cst_65 : f32 to vector<8x32xf32>
      %154 = arith.addf %153, %152 : vector<8x32xf32>
      %155 = arith.divf %153, %154 : vector<8x32xf32>
      %156 = vector.extract_strided_slice %149 {offsets = [0, 64], sizes = [8, 32], strides = [1, 1]} : vector<8x128xf32> to vector<8x32xf32>
      %157 = math.tanh %156 : vector<8x32xf32>
      %158 = vector.extract_strided_slice %149 {offsets = [0, 96], sizes = [8, 32], strides = [1, 1]} : vector<8x128xf32> to vector<8x32xf32>
      %159 = arith.negf %158 : vector<8x32xf32>
      %160 = math.exp %159 : vector<8x32xf32>
      %cst_66 = arith.constant 1.000000e+00 : f32
      %161 = vector.broadcast %cst_66 : f32 to vector<8x32xf32>
      %162 = arith.addf %161, %160 : vector<8x32xf32>
      %163 = arith.divf %161, %162 : vector<8x32xf32>
      %164 = arith.mulf %155, %157 : vector<8x32xf32>
      %165 = math.tanh %164 : vector<8x32xf32>
      %166 = arith.mulf %163, %165 : vector<8x32xf32>
      %c0_67 = arith.constant 0 : index
      %c32 = arith.constant 32 : index
      %167 = vector.load %arg4[%c0_67, %c32] : memref<8x64xf32, #tpu.memory_space<vmem>>, vector<8x32xf32>
      tpu.vector_store %arg4[%c0_67, %c32], %166 {strides = array<i32>} : memref<8x64xf32, #tpu.memory_space<vmem>>, vector<8x32xf32>,
    } else {
    }
    return
  }
  func.func @transform_0(%arg0: i32) -> (i32, i32) {
    %c0_i32 = arith.constant 0 : i32
    %c0_i32_0 = arith.constant 0 : i32
    return %arg0, %c0_i32 : i32, i32
  }
  func.func @transform_1(%arg0: i32) -> (i32, i32) {
    %c0_i32 = arith.constant 0 : i32
    %c0_i32_0 = arith.constant 0 : i32
    %c0_i32_1 = arith.constant 0 : i32
    return %c0_i32, %c0_i32_0 : i32, i32
  }
  func.func @transform_2(%arg0: i32) -> (i32, i32) {
    %c0_i32 = arith.constant 0 : i32
    %c0_i32_0 = arith.constant 0 : i32
    %c0_i32_1 = arith.constant 0 : i32
    return %c0_i32, %c0_i32_0 : i32, i32
  }
  func.func @transform_3(%arg0: i32) -> (i32, i32) {
    %c0_i32 = arith.constant 0 : i32
    %c0_i32_0 = arith.constant 0 : i32
    %c0_i32_1 = arith.constant 0 : i32
    return %c0_i32, %c0_i32_0 : i32, i32
  }
}

</mosaic_0001>

<bundles_post_ra>
// kernel: sequence_encoder_forward.4
= control target key start
LH: loop header
LB: loop body
LE: loop exit
PB: predicated region body
PF: predicated region fallthrough
CT: control target
= control target key end

     0   :  { %v217_v3 = vmov 0.0   ;;  %vm40_vm0 = vcmask 130048   ;;  %v30_v15 = vlaneseq  ;;  %s338_s1 = inlined_call_operand.vmem [shape: f32[16,256], index: 1, kind: input, shape index: {}]   ;;  %s339_s0 = inlined_call_operand.vmem [shape: f32[64,16], index: 0, kind: input, shape index: {}]   ;;  %s340_s2 = inlined_call_operand.vmem [shape: f32[1,256], index: 2, kind: input, shape index: {}]   ;;  %s341_s3 = inlined_call_operand.vmem [shape: f32[64,128], index: 3, kind: output, shape index: {0}]   ;;  %s342_s4 = inlined_call_operand.vmem [shape: f32[64,128], index: 4, kind: output, shape index: {1}]  }
   0x1   :  { %v25_v0 = vld [vmem:[%s338_s1 + $0x8] sm:$0xff]  ;;  %v27_v1 = vld [vmem:[%s338_s1 + $0x18] sm:$0xff]  ;;  %v24_v2 = vld [vmem:[%s338_s1] sm:$0xff]  ;;  %129 = vmatprep.mubr.f32.mxu0 %v217_v3  ;;  %153 = vmatprep.mubr.f32.mxu1 %v217_v3 }
   0x2   :  { %v210_v4 = vpack.c.bf16 %v27_v1, %v25_v0  ;;  %v26_v5 = vld [vmem:[%s338_s1 + $0x10] sm:$0xff]  ;;  %v16_v7 = vld [vmem:[%s339_s0] sm:$0xff]  ;;  %v17_v9 = vld [vmem:[%s339_s0 + $0x8] sm:$0xff]  ;;  %v31_v16 = vshrl.u32 %v30_v15, 7 }
   0x3   :  { %v212_v6 = vpack.c.bf16 %v26_v5, %v24_v2  ;;  %v20_v8 = vld [vmem:[%s339_s0 + $0x20] sm:$0xff]  ;;  %v21_v10 = vld [vmem:[%s339_s0 + $0x28] sm:$0xff]  ;;  %v18_v11 = vld [vmem:[%s339_s0 + $0x10] sm:$0xff] }
   0x4   :  { %211 = vmatprep.subr.bf16.mxu0 %v210_v4  ;;  %214 = vmatprep.subr.bf16.mxu1 %v210_v4  ;;  %v22_v12 = vld [vmem:[%s339_s0 + $0x30] sm:$0xff]  ;;  %v19_v13 = vld [vmem:[%s339_s0 + $0x18] sm:$0xff]  ;;  %v32_v17 = vsub.s32 0, %v31_v16  ;;  %v28_v18 = vld [vmem:[%s340_s2] sm:$0x3]  ;;  %v36_v19 = vsub.s32 1, %v31_v16 }
   0x5   :  { %213 = vmatpush1.bf16.msra.mxu0 %v212_v6  ;;  %215 = vmatpush1.bf16.msra.mxu1 %v212_v6  ;;  %v23_v14 = vld [vmem:[%s339_s0 + $0x38] sm:$0xff] }
   0x6   :  { %v33_v20 = vrot.slane %v28_v18, %v32_v17  ;;  %v37_v21 = vrot.slane %v28_v18, %v36_v19 }
   0x8   :  { %202 = vmatmul.mubr.msk.f32.vlgmr.msra.gmra.mrb[0].mxu0 %vm40_vm0, %v16_v7  ;;  %206 = vmatmul.mubr.msk.f32.vlgmr.msra.gmra.mrb[0].mxu1 %vm40_vm0, %v20_v8 }
   0x9   :  { %135 = vmatprep.mubr.f32.mxu0 %v217_v3  ;;  %159 = vmatprep.mubr.f32.mxu1 %v217_v3 }
   0xc   :  { %203 = vmatmul.mubr.msk.f32.gmra.mrb[2].mxu0 %vm40_vm0, %v17_v9  ;;  %207 = vmatmul.mubr.msk.f32.gmra.mrb[2].mxu1 %vm40_vm0, %v21_v10 }
   0xd   :  { %141 = vmatprep.mubr.f32.mxu0 %v217_v3  ;;  %165 = vmatprep.mubr.f32.mxu1 %v217_v3 }
  0x10   :  { %204 = vmatmul.mubr.msk.f32.gmra.mrb[4].mxu0 %vm40_vm0, %v18_v11  ;;  %208 = vmatmul.mubr.msk.f32.gmra.mrb[4].mxu1 %vm40_vm0, %v22_v12 }
  0x11   :  { %147 = vmatprep.mubr.f32.mxu0 %v217_v3  ;;  %171 = vmatprep.mubr.f32.mxu1 %v217_v3 }
  0x14   :  { %205 = vmatmul.mubr.msk.f32.gmra.mrb[6].mxu0 %vm40_vm0, %v19_v13  ;;  %209 = vmatmul.mubr.msk.f32.gmra.mrb[6].mxu1 %vm40_vm0, %v23_v14 }
  0xdb   :  { %v131_v22 = vpop.f32.mrb[0].mxu0  ;;  %v155_v23 = vpop.f32.mrb[0].mxu1 }
  0xdc   :  { %v132_v24 = vadd.f32 %v131_v22, %v33_v20  ;;  %v156_v25 = vadd.f32 %v155_v23, %v33_v20  ;;  %v133_v26 = vpop.f32.mrb[1].mxu0  ;;  %v157_v27 = vpop.f32.mrb[1].mxu1 }
  0xdd   :  { %v134_v28 = vadd.f32 %v133_v26, %v37_v21  ;;  %v158_v29 = vadd.f32 %v157_v27, %v37_v21 }
  0xde   :  { %178 = vst [vmem:[%s341_s3] sm:$0xff] %v132_v24  ;;  %182 = vst [vmem:[%s341_s3 + $0x20] sm:$0xff] %v156_v25 }
  0xdf   :  { %186 = vst [vmem:[%s342_s4] sm:$0xff] %v134_v28  ;;  %190 = vst [vmem:[%s342_s4 + $0x20] sm:$0xff] %v158_v29  ;;  %v137_v30 = vpop.f32.mrb[2].mxu0  ;;  %v161_v31 = vpop.f32.mrb[2].mxu1 }
  0xe0   :  { %v138_v32 = vadd.f32 %v137_v30, %v33_v20  ;;  %v162_v33 = vadd.f32 %v161_v31, %v33_v20  ;;  %v139_v34 = vpop.f32.mrb[3].mxu0  ;;  %v163_v35 = vpop.f32.mrb[3].mxu1 }
  0xe1   :  { %v140_v36 = vadd.f32 %v139_v34, %v37_v21  ;;  %v164_v37 = vadd.f32 %v163_v35, %v37_v21 }
  0xe2   :  { %179 = vst [vmem:[%s341_s3 + $0x8] sm:$0xff] %v138_v32  ;;  %183 = vst [vmem:[%s341_s3 + $0x28] sm:$0xff] %v162_v33 }
  0xe3   :  { %187 = vst [vmem:[%s342_s4 + $0x8] sm:$0xff] %v140_v36  ;;  %191 = vst [vmem:[%s342_s4 + $0x28] sm:$0xff] %v164_v37  ;;  %v143_v38 = vpop.f32.mrb[4].mxu0  ;;  %v167_v39 = vpop.f32.mrb[4].mxu1 }
  0xe4   :  { %v144_v40 = vadd.f32 %v143_v38, %v33_v20  ;;  %v168_v41 = vadd.f32 %v167_v39, %v33_v20  ;;  %v145_v42 = vpop.f32.mrb[5].mxu0  ;;  %v169_v43 = vpop.f32.mrb[5].mxu1 }
  0xe5   :  { %v146_v44 = vadd.f32 %v145_v42, %v37_v21  ;;  %v170_v45 = vadd.f32 %v169_v43, %v37_v21 }
  0xe6   :  { %180 = vst [vmem:[%s341_s3 + $0x10] sm:$0xff] %v144_v40  ;;  %184 = vst [vmem:[%s341_s3 + $0x30] sm:$0xff] %v168_v41 }
  0xe7   :  { %188 = vst [vmem:[%s342_s4 + $0x10] sm:$0xff] %v146_v44  ;;  %192 = vst [vmem:[%s342_s4 + $0x30] sm:$0xff] %v170_v45  ;;  %v149_v46 = vpop.f32.mrb[6].mxu0  ;;  %v173_v47 = vpop.f32.mrb[6].mxu1 }
  0xe8   :  { %v150_v48 = vadd.f32 %v149_v46, %v33_v20  ;;  %v174_v49 = vadd.f32 %v173_v47, %v33_v20  ;;  %v151_v50 = vpop.f32.mrb[7].mxu0  ;;  %v175_v51 = vpop.f32.mrb[7].mxu1 }
  0xe9   :  { %v152_v52 = vadd.f32 %v151_v50, %v37_v21  ;;  %v176_v53 = vadd.f32 %v175_v51, %v37_v21 }
  0xea   :  { %181 = vst [vmem:[%s341_s3 + $0x18] sm:$0xff] %v150_v48  ;;  %185 = vst [vmem:[%s341_s3 + $0x38] sm:$0xff] %v174_v49 }
  0xeb   :  { %189 = vst [vmem:[%s342_s4 + $0x18] sm:$0xff] %v152_v52  ;;  %193 = vst [vmem:[%s342_s4 + $0x38] sm:$0xff] %v176_v53 }

// kernel: sequence_encoder_forward.6
= control target key start
LH: loop header
LB: loop body
LE: loop exit
PB: predicated region body
PF: predicated region fallthrough
CT: control target
= control target key end

     0   :  { %v430_v3 = vmov 0.0   ;;  %vm54_vm0 = vcmask 261120   ;;  %v331_v41 = vlaneseq  ;;  %s665_s3 = inlined_call_operand.vmem [shape: f32[32,256], index: 3, kind: input, shape index: {}]   ;;  %s666_s2 = inlined_call_operand.vmem [shape: f32[32,256], index: 2, kind: input, shape index: {}]   ;;  %s667_s1 = inlined_call_operand.vmem [shape: f32[64,32], index: 1, kind: input, shape index: {}]   ;;  %s668_s0 = inlined_call_operand.vmem [shape: f32[64,32], index: 0, kind: input, shape index: {}]   ;;  %s669_s4 = inlined_call_operand.vmem [shape: f32[1,256], index: 4, kind: input, shape index: {}]   ;;  %s670_s5 = inlined_call_operand.vmem [shape: f32[64,128], index: 5, kind: output, shape index: {0}]   ;;  %s671_s6 = inlined_call_operand.vmem [shape: f32[64,128], index: 6, kind: output, shape index: {1}]  }
   0x1   :  { %v47_v0 = vld [vmem:[%s665_s3 + $0x8] sm:$0xff]  ;;  %v49_v1 = vld [vmem:[%s665_s3 + $0x18] sm:$0xff]  ;;  %143 = vmatprep.mubr.f32.mxu1 %v430_v3  ;;  %280 = vmatprep.mubr.f32.mxu0 %v430_v3  ;;  %v46_v6 = vld [vmem:[%s665_s3] sm:$0xff] }
   0x2   :  { %v31_v2 = vld [vmem:[%s666_s2 + $0x8] sm:$0xff]  ;;  %v397_v4 = vpack.c.bf16 %v49_v1, %v47_v0  ;;  %v33_v5 = vld [vmem:[%s666_s2 + $0x18] sm:$0xff]  ;;  %v48_v7 = vld [vmem:[%s665_s3 + $0x10] sm:$0xff]  ;;  %v332_v42 = vshrl.u32 %v331_v41, 7 }
   0x3   :  { %v405_v8 = vpack.c.bf16 %v33_v5, %v31_v2  ;;  %v399_v9 = vpack.c.bf16 %v48_v7, %v46_v6  ;;  %v30_v10 = vld [vmem:[%s666_s2] sm:$0xff]  ;;  %v32_v11 = vld [vmem:[%s666_s2 + $0x10] sm:$0xff]  ;;  %v51_v12 = vld [vmem:[%s665_s3 + $0x28] sm:$0xff] }
   0x4   :  { %398 = vmatprep.subr.bf16.mxu1 %v397_v4  ;;  %v407_v13 = vpack.c.bf16 %v32_v11, %v30_v10  ;;  %v53_v14 = vld [vmem:[%s665_s3 + $0x38] sm:$0xff]  ;;  %v35_v15 = vld [vmem:[%s666_s2 + $0x28] sm:$0xff]  ;;  %v50_v19 = vld [vmem:[%s665_s3 + $0x20] sm:$0xff]  ;;  %v333_v43 = vsub.s32 0, %v332_v42  ;;  %v337_v45 = vsub.s32 1, %v332_v42 }
   0x5   :  { %v37_v16 = vld [vmem:[%s666_s2 + $0x38] sm:$0xff]  ;;  %406 = vmatprep.subr.bf16.mxu0 %v405_v8  ;;  %400 = vmatpush1.bf16.msra.mxu1 %v399_v9  ;;  %v401_v17 = vpack.c.bf16 %v53_v14, %v51_v12  ;;  %v52_v20 = vld [vmem:[%s665_s3 + $0x30] sm:$0xff]  ;;  %v34_v21 = vld [vmem:[%s666_s2 + $0x20] sm:$0xff] }
   0x6   :  { %v409_v18 = vpack.c.bf16 %v37_v16, %v35_v15  ;;  %408 = vmatpush1.bf16.msra.mxu0 %v407_v13  ;;  %v403_v22 = vpack.c.bf16 %v52_v20, %v50_v19  ;;  %v36_v23 = vld [vmem:[%s666_s2 + $0x30] sm:$0xff]  ;;  %v38_v25 = vld [vmem:[%s667_s1] sm:$0xff]  ;;  %v39_v27 = vld [vmem:[%s667_s1 + $0x8] sm:$0xff] }
   0x7   :  { %402 = vmatprep.subr.bf16.mxu1 %v401_v17  ;;  %v411_v24 = vpack.c.bf16 %v36_v23, %v34_v21  ;;  %v22_v26 = vld [vmem:[%s668_s0] sm:$0xff]  ;;  %v23_v28 = vld [vmem:[%s668_s0 + $0x8] sm:$0xff]  ;;  %v40_v29 = vld [vmem:[%s667_s1 + $0x10] sm:$0xff] }
   0x8   :  { %410 = vmatprep.subr.bf16.mxu0 %v409_v18  ;;  %v24_v30 = vld [vmem:[%s668_s0 + $0x10] sm:$0xff]  ;;  %v41_v31 = vld [vmem:[%s667_s1 + $0x18] sm:$0xff]  ;;  %v42_v33 = vld [vmem:[%s667_s1 + $0x20] sm:$0xff] }
   0x9   :  { %404 = vmatpush1.bf16.msra.mxu1 %v403_v22  ;;  %v25_v32 = vld [vmem:[%s668_s0 + $0x18] sm:$0xff]  ;;  %v26_v34 = vld [vmem:[%s668_s0 + $0x20] sm:$0xff]  ;;  %v43_v35 = vld [vmem:[%s667_s1 + $0x28] sm:$0xff] }
   0xa   :  { %412 = vmatpush1.bf16.msra.mxu0 %v411_v24  ;;  %v27_v36 = vld [vmem:[%s668_s0 + $0x28] sm:$0xff]  ;;  %v44_v37 = vld [vmem:[%s667_s1 + $0x30] sm:$0xff]  ;;  %v45_v39 = vld [vmem:[%s667_s1 + $0x38] sm:$0xff] }
   0xb   :  { %v28_v38 = vld [vmem:[%s668_s0 + $0x30] sm:$0xff]  ;;  %v29_v40 = vld [vmem:[%s668_s0 + $0x38] sm:$0xff]  ;;  %v329_v44 = vld [vmem:[%s669_s4] sm:$0x3] }
   0xc   :  { %381 = vmatmul.mubr.msk.f32.vlgmr.msra.gmra.mrb[0].mxu1 %vm54_vm0, %v38_v25  ;;  %v597_v47 = vrot.slane %v329_v44, %v333_v43  ;;  %v599_v50 = vrot.slane %v329_v44, %v337_v45 }
   0xd   :  { %389 = vmatmul.mubr.msk.f32.vlgmr.msra.gmra.mrb[0].mxu0 %vm54_vm0, %v22_v26  ;;  %149 = vmatprep.mubr.f32.mxu1 %v430_v3 }
   0xe   :  { %286 = vmatprep.mubr.f32.mxu0 %v430_v3 }
  0x10   :  { %382 = vmatmul.mubr.msk.f32.gmra.mrb[2].mxu1 %vm54_vm0, %v39_v27 }
  0x11   :  { %390 = vmatmul.mubr.msk.f32.gmra.mrb[2].mxu0 %vm54_vm0, %v23_v28  ;;  %155 = vmatprep.mubr.f32.mxu1 %v430_v3 }
  0x12   :  { %292 = vmatprep.mubr.f32.mxu0 %v430_v3 }
  0x14   :  { %383 = vmatmul.mubr.msk.f32.gmra.mrb[4].mxu1 %vm54_vm0, %v40_v29 }
  0x15   :  { %391 = vmatmul.mubr.msk.f32.gmra.mrb[4].mxu0 %vm54_vm0, %v24_v30  ;;  %161 = vmatprep.mubr.f32.mxu1 %v430_v3 }
  0x16   :  { %298 = vmatprep.mubr.f32.mxu0 %v430_v3 }
  0x18   :  { %384 = vmatmul.mubr.msk.f32.gmra.mrb[6].mxu1 %vm54_vm0, %v41_v31 }
  0x19   :  { %392 = vmatmul.mubr.msk.f32.gmra.mrb[6].mxu0 %vm54_vm0, %v25_v32  ;;  %167 = vmatprep.mubr.f32.mxu1 %v430_v3 }
  0x1a   :  { %304 = vmatprep.mubr.f32.mxu0 %v430_v3 }
  0x1c   :  { %385 = vmatmul.mubr.msk.f32.gmra.mrb[8].mxu1 %vm54_vm0, %v42_v33 }
  0x1d   :  { %393 = vmatmul.mubr.msk.f32.gmra.mrb[8].mxu0 %vm54_vm0, %v26_v34  ;;  %173 = vmatprep.mubr.f32.mxu1 %v430_v3 }
  0x1e   :  { %310 = vmatprep.mubr.f32.mxu0 %v430_v3 }
  0x20   :  { %386 = vmatmul.mubr.msk.f32.gmra.mrb[10].mxu1 %vm54_vm0, %v43_v35 }
  0x21   :  { %394 = vmatmul.mubr.msk.f32.gmra.mrb[10].mxu0 %vm54_vm0, %v27_v36  ;;  %179 = vmatprep.mubr.f32.mxu1 %v430_v3 }
  0x22   :  { %316 = vmatprep.mubr.f32.mxu0 %v430_v3 }
  0x24   :  { %387 = vmatmul.mubr.msk.f32.gmra.mrb[12].mxu1 %vm54_vm0, %v44_v37 }
  0x25   :  { %395 = vmatmul.mubr.msk.f32.gmra.mrb[12].mxu0 %vm54_vm0, %v28_v38  ;;  %185 = vmatprep.mubr.f32.mxu1 %v430_v3 }
  0x26   :  { %322 = vmatprep.mubr.f32.mxu0 %v430_v3 }
  0x28   :  { %388 = vmatmul.mubr.msk.f32.gmra.mrb[14].mxu1 %vm54_vm0, %v45_v39 }
  0x29   :  { %396 = vmatmul.mubr.msk.f32.gmra.mrb[14].mxu0 %vm54_vm0, %v29_v40 }
  0xdf   :  { %v145_v46 = vpop.f32.mrb[0].mxu1 }
  0xe0   :  { %v282_v48 = vpop.f32.mrb[0].mxu0  ;;  %v147_v49 = vpop.f32.mrb[1].mxu1 }
  0xe1   :  { %v283_v51 = vadd.f32 %v282_v48, %v145_v46  ;;  %v284_v52 = vpop.f32.mrb[1].mxu0 }
  0xe2   :  { %v285_v53 = vadd.f32 %v284_v52, %v147_v49 }
  0xe3   :  { %v341_v54 = vadd.f32 %v597_v47, %v283_v51  ;;  %v151_v55 = vpop.f32.mrb[2].mxu1 }
  0xe4   :  { %v342_v56 = vadd.f32 %v599_v50, %v285_v53  ;;  %v288_v57 = vpop.f32.mrb[2].mxu0  ;;  %v153_v58 = vpop.f32.mrb[3].mxu1 }
  0xe5   :  { %357 = vst [vmem:[%s670_s5] sm:$0xff] %v341_v54  ;;  %v289_v59 = vadd.f32 %v288_v57, %v151_v55  ;;  %v290_v60 = vpop.f32.mrb[3].mxu0 }
  0xe6   :  { %365 = vst [vmem:[%s671_s6] sm:$0xff] %v342_v56  ;;  %v291_v61 = vadd.f32 %v290_v60, %v153_v58 }
  0xe7   :  { %v343_v62 = vadd.f32 %v597_v47, %v289_v59  ;;  %v157_v63 = vpop.f32.mrb[4].mxu1 }
  0xe8   :  { %v344_v0 = vadd.f32 %v599_v50, %v291_v61  ;;  %v294_v1 = vpop.f32.mrb[4].mxu0  ;;  %v159_v2 = vpop.f32.mrb[5].mxu1 }
  0xe9   :  { %358 = vst [vmem:[%s670_s5 + $0x8] sm:$0xff] %v343_v62  ;;  %v295_v3 = vadd.f32 %v294_v1, %v157_v63  ;;  %v296_v4 = vpop.f32.mrb[5].mxu0 }
  0xea   :  { %366 = vst [vmem:[%s671_s6 + $0x8] sm:$0xff] %v344_v0  ;;  %v297_v5 = vadd.f32 %v296_v4, %v159_v2 }
  0xeb   :  { %v345_v6 = vadd.f32 %v597_v47, %v295_v3  ;;  %v163_v7 = vpop.f32.mrb[6].mxu1 }
  0xec   :  { %v346_v8 = vadd.f32 %v599_v50, %v297_v5  ;;  %v300_v9 = vpop.f32.mrb[6].mxu0  ;;  %v165_v10 = vpop.f32.mrb[7].mxu1 }
  0xed   :  { %359 = vst [vmem:[%s670_s5 + $0x10] sm:$0xff] %v345_v6  ;;  %v301_v11 = vadd.f32 %v300_v9, %v163_v7  ;;  %v302_v12 = vpop.f32.mrb[7].mxu0 }
  0xee   :  { %367 = vst [vmem:[%s671_s6 + $0x10] sm:$0xff] %v346_v8  ;;  %v303_v13 = vadd.f32 %v302_v12, %v165_v10 }
  0xef   :  { %v347_v14 = vadd.f32 %v597_v47, %v301_v11  ;;  %v169_v15 = vpop.f32.mrb[8].mxu1 }
  0xf0   :  { %v348_v16 = vadd.f32 %v599_v50, %v303_v13  ;;  %v306_v17 = vpop.f32.mrb[8].mxu0  ;;  %v171_v18 = vpop.f32.mrb[9].mxu1 }
  0xf1   :  { %360 = vst [vmem:[%s670_s5 + $0x18] sm:$0xff] %v347_v14  ;;  %v307_v19 = vadd.f32 %v306_v17, %v169_v15  ;;  %v308_v20 = vpop.f32.mrb[9].mxu0 }
  0xf2   :  { %368 = vst [vmem:[%s671_s6 + $0x18] sm:$0xff] %v348_v16  ;;  %v309_v21 = vadd.f32 %v308_v20, %v171_v18 }
  0xf3   :  { %v349_v22 = vadd.f32 %v597_v47, %v307_v19  ;;  %v175_v23 = vpop.f32.mrb[10].mxu1 }
  0xf4   :  { %v350_v24 = vadd.f32 %v599_v50, %v309_v21  ;;  %v312_v25 = vpop.f32.mrb[10].mxu0  ;;  %v177_v26 = vpop.f32.mrb[11].mxu1 }
  0xf5   :  { %361 = vst [vmem:[%s670_s5 + $0x20] sm:$0xff] %v349_v22  ;;  %v313_v27 = vadd.f32 %v312_v25, %v175_v23  ;;  %v314_v28 = vpop.f32.mrb[11].mxu0 }
  0xf6   :  { %369 = vst [vmem:[%s671_s6 + $0x20] sm:$0xff] %v350_v24  ;;  %v315_v29 = vadd.f32 %v314_v28, %v177_v26 }
  0xf7   :  { %v351_v30 = vadd.f32 %v597_v47, %v313_v27  ;;  %v181_v31 = vpop.f32.mrb[12].mxu1 }
  0xf8   :  { %v352_v32 = vadd.f32 %v599_v50, %v315_v29  ;;  %v318_v33 = vpop.f32.mrb[12].mxu0  ;;  %v183_v34 = vpop.f32.mrb[13].mxu1 }
  0xf9   :  { %362 = vst [vmem:[%s670_s5 + $0x28] sm:$0xff] %v351_v30  ;;  %v319_v35 = vadd.f32 %v318_v33, %v181_v31  ;;  %v320_v36 = vpop.f32.mrb[13].mxu0 }
  0xfa   :  { %370 = vst [vmem:[%s671_s6 + $0x28] sm:$0xff] %v352_v32  ;;  %v321_v37 = vadd.f32 %v320_v36, %v183_v34 }
  0xfb   :  { %v353_v38 = vadd.f32 %v597_v47, %v319_v35  ;;  %v187_v39 = vpop.f32.mrb[14].mxu1 }
  0xfc   :  { %v354_v40 = vadd.f32 %v599_v50, %v321_v37  ;;  %v324_v41 = vpop.f32.mrb[14].mxu0  ;;  %v189_v42 = vpop.f32.mrb[15].mxu1 }
  0xfd   :  { %363 = vst [vmem:[%s670_s5 + $0x30] sm:$0xff] %v353_v38  ;;  %v325_v43 = vadd.f32 %v324_v41, %v187_v39  ;;  %v326_v44 = vpop.f32.mrb[15].mxu0 }
  0xfe   :  { %371 = vst [vmem:[%s671_s6 + $0x30] sm:$0xff] %v354_v40  ;;  %v327_v45 = vadd.f32 %v326_v44, %v189_v42 }
  0xff   :  { %v355_v46 = vadd.f32 %v597_v47, %v325_v43 }
 0x100   :  { %v356_v48 = vadd.f32 %v599_v50, %v327_v45 }
 0x101   :  { %364 = vst [vmem:[%s670_s5 + $0x38] sm:$0xff] %v355_v46 }
 0x102   :  { %372 = vst [vmem:[%s671_s6 + $0x38] sm:$0xff] %v356_v48 }

// kernel: sequence_encoder_forward.5
= control target key start
LH: loop header
LB: loop body
LE: loop exit
PB: predicated region body
PF: predicated region fallthrough
CT: control target
= control target key end

     0   :  { %s1683_s18 = smov 0   ;;  %s1890_s0 = inlined_call_operand.vmem [shape: f32[64,128], index: 0, kind: input, shape index: {}]   ;;  %s1891_s1 = inlined_call_operand.vmem [shape: f32[64,128], index: 1, kind: input, shape index: {}]   ;;  %s1892_s2 = inlined_call_operand.vmem [shape: f32[32,128], index: 2, kind: input, shape index: {}]   ;;  %s1893_s3 = inlined_call_operand.vmem [shape: f32[32,128], index: 3, kind: input, shape index: {}]   ;;  %s1894_s4 = inlined_call_operand.vmem [shape: f32[64,32], index: 4, kind: output, shape index: {0}]   ;;  %s1895_s5 = inlined_call_operand.vmem [shape: f32[64,32], index: 5, kind: output, shape index: {1}]  }
   0x1 LB: > { %s1339_s19 = sadd.s32 4294967295, %s1644_s18   ;;  %p1343_p0 = scmp.ge.s32.totalorder %s1644_s18, 1  ;;  %s1644_s18 = sphi %s1683_s18, %s16_s18  }
   0x2   : > { %p208_p1 = scmp.lt.s32.totalorder %s1644_s18, 3 }
   0x4   : > { %p209_p2 = pnand %p1343_p0, %p208_p1 }
   0x5   : > { %s1344_s20 = sshll.u32 (!%p209_p2), %s1339_s19, 2  ;;  %s254_s21 = ssub.s32 (!%p209_p2), 1, %s1339_s19 }
   0x6   : > { %212 = sbr.rel (%p209_p2) target bundleno = 2871 (0xb37), region = 36  ;;  %p249_p3 = scmp.lt.s32.totalorder (!%p209_p2), %s1344_s20, 7 }
   0x7   : > { %s1346_s22 = sshll.u32 (!%p209_p2), %s254_s21, 2  ;;  %p1352_p5 = scmp.ne.s32.totalorder (!%p209_p2), %s1339_s19, 0 }
   0x8   : > { %p256_p4 = scmp.lt.s32.totalorder (!%p209_p2), %s1346_s22, 7 }
   0xd   : > { %s1897_s20 = smov (!%p249_p3, %s1344_s20), 7  ;;  %s1899_s22 = smov (!%p256_p4, %s1346_s22), 7 }
   0xe   : > { %s1345_s23 = sshll.u32 %s1897_s20, 3  ;;  %s1347_s27 = sshll.u32 %s1899_s22, 3  ;;  %vm280_vm0 = vcmask (!%p1352_p5), 261120   ;;  %v1646_v0 = vmov (!%p1352_p5), 0.0  }
   0xf   : > { %s1694_s26 = scalar_lea.vmem %s1890_s0, %s1345_s23  ;;  %s1699_s30 = scalar_lea.vmem %s1891_s1, %s1347_s27  ;;  %281 = vst.msk [vmem:[#allocation2] sm:$0xff] (!%p1352_p5), %vm280_vm0, %v1646_v0  ;;  %282 = vst.msk [vmem:[#allocation3] sm:$0xff] (!%p1352_p5), %vm280_vm0, %v1646_v0 }
  0x10   : > { %s1704_s8 = scalar_lea.vmem %s1894_s4, %s1345_s23  ;;  %s1709_s11 = scalar_lea.vmem %s1895_s5, %s1347_s27  ;;  %283 = vst.msk [vmem:[#allocation4] sm:$0xff] (!%p1352_p5), %vm280_vm0, %v1646_v0  ;;  %284 = vst.msk [vmem:[#allocation5] sm:$0xff] (!%p1352_p5), %vm280_vm0, %v1646_v0 }
  0x11   : > { %279 = sbr.rel (%p1352_p5) target bundleno = 24 (0x18), region = 40 }
  0x18 PF: > { %v285_v1 = vld [vmem:[%s1892_s2] sm:$0xff]  ;;  %v286_v2 = vld [vmem:[%s1892_s2 + $0x8] sm:$0xff]  ;;  %v1647_v4 = vmov 0.0|0.0   ;;  %v287_v7 = vld [vmem:[%s1892_s2 + $0x10] sm:$0xff]  ;;  %vm1648_vm1 = vmmov 0   ;;  %v1649_v10 = vmov 0.0  }
  0x19   : > { %v289_v3 = vld [vmem:[%s1893_s3] sm:$0xff]  ;;  %1511 = vmatprep.subr.bf16.mxu0 %v1647_v4  ;;  %v1721_v5 = vpack.c.bf16 %v286_v2, %v285_v1  ;;  %1517 = vmatprep.subr.bf16.mxu1 %v1647_v4  ;;  %v290_v6 = vld [vmem:[%s1893_s3 + $0x8] sm:$0xff]  ;;  %v288_v8 = vld [vmem:[%s1892_s2 + $0x18] sm:$0xff]  ;;  %s1650_s6 = smov 32   ;;  %vm296_vm2 = vcmask 261120   ;;  %s1651_s7 = smov 64  }
  0x1a   : > { %v1733_v9 = vpack.c.bf16 %v290_v6, %v289_v3  ;;  %1431 = vmatprep.mubr.msk.f32.mxu0 %vm1648_vm1, %v1649_v10  ;;  %v291_v11 = vld [vmem:[%s1893_s3 + $0x10] sm:$0xff]  ;;  %v292_v12 = vld [vmem:[%s1893_s3 + $0x18] sm:$0xff]  ;;  %1442 = vmatprep.mubr.msk.f32.mxu1 %vm1648_vm1, %v1649_v10  ;;  %v1746_v13 = vpack.c.bf16 %v288_v8, %v287_v7  ;;  %v295_v14 = vld [vmem:[#allocation3] sm:$0xff]  ;;  %s1652_s9 = smov 96  }
  0x1b   : > { %1513 = vmatpush3.bf16.msra.mxu0 %v1721_v5  ;;  %v1750_v15 = vpack.c.bf16 %v292_v12, %v291_v11  ;;  %379 = vrot.lane.b32.xlu1 %v295_v14, %s1650_s6  ;;  %v402_v16 = vld [vmem:[#allocation5] sm:$0xff]  ;;  %v294_v17 = vld [vmem:[#allocation2] sm:$0xff]  ;;  %v401_v18 = vld [vmem:[#allocation4] sm:$0xff] }
  0x1c   : > { %1514 = vmatprep.subr.bf16.mxu0 %v1647_v4  ;;  %1519 = vmatpush3.bf16.msra.mxu1 %v1733_v9  ;;  %v293_v19 = vld [vmem:[%s1694_s26] sm:$0xff]  ;;  %v1355_v20 = vld [vmem:[%s1699_s30 + $0x18] sm:$0xff]  ;;  %v1359_v61 = vld [vmem:[%s1694_s26 + $0x8] sm:$0xff] }
  0x1d   : > { %1520 = vmatprep.subr.bf16.mxu1 %v1647_v4  ;;  %v1362_v1 = vld [vmem:[%s1699_s30 + $0x10] sm:$0xff] }
  0x1f   : > { %1516 = vmatpush3.bf16.msra.mxu0 %v1746_v13  ;;  %485 = vrot.lane.b32.xlu1 %v402_v16, %s1650_s6 }
  0x20   : > { %1522 = vmatpush3.bf16.msra.mxu1 %v1750_v15  ;;  %1523 = vmatprep.subr.bf16.mxu0 %v1647_v4 }
  0x21   : > { %1529 = vmatprep.subr.bf16.mxu1 %v1647_v4 }
  0x22   : > { %1432 = vmatmul.mubr.msk.f32.vlgmr.msra.gmra.mrb[0].mxu0 %vm296_vm2, %v294_v17 }
  0x23   : > { %1443 = vmatmul.mubr.msk.f32.vlgmr.msra.gmra.mrb[0].mxu1 %vm296_vm2, %v401_v18  ;;  %1525 = vmatpush3.bf16.msra.mxu0 %v1721_v5 }
  0x24   : > { %1526 = vmatprep.subr.bf16.mxu0 %v1647_v4  ;;  %1531 = vmatpush3.bf16.msra.mxu1 %v1733_v9 }
  0x25   : > { %1453 = vmatprep.mubr.msk.f32.mxu0 %vm1648_vm1, %v1649_v10  ;;  %1532 = vmatprep.subr.bf16.mxu1 %v1647_v4 }
  0x26   : > { %1464 = vmatprep.mubr.msk.f32.mxu1 %vm1648_vm1, %v1649_v10 }
  0x27   : > { %1528 = vmatpush3.bf16.msra.mxu0 %v1746_v13 }
  0x28   : > { %1534 = vmatpush3.bf16.msra.mxu1 %v1750_v15  ;;  %1535 = vmatprep.subr.bf16.mxu0 %v1647_v4 }
  0x29   : > { %1541 = vmatprep.subr.bf16.mxu1 %v1647_v4 }
  0x8d   : > { %v380_v41 = vpop.permute.xlu1 %379 }
  0x91   : > { %v486_v43 = vpop.permute.xlu1 %485 }
  0xf5   : > { %v366_v21 = vpop.f32.mrb[0].mxu0 }
  0xf6   : > { %v370_v22 = vadd.f32 %v366_v21, %v293_v19  ;;  %v1433_v23 = vpop.f32.mrb[1].mxu0  ;;  %v472_v24 = vpop.f32.mrb[0].mxu1 }
  0xf7   : > { %v476_v25 = vadd.f32 %v1355_v20, %v472_v24  ;;  %v1444_v26 = vpop.f32.mrb[1].mxu1 }
  0xf8   : > { %1574 = vtanh.f32 %v370_v22  ;;  %v1354_v29 = vmul.f32 -1.442695, %v370_v22 }
  0xf9   : > { %1576 = vtanh.f32 %v476_v25  ;;  %v1357_v30 = vmul.f32 -1.442695, %v476_v25 }
  0xfa   : > { %1578 = vpow2.f32 %v1354_v29 }
  0xfb   : > { %1580 = vpow2.f32 %v1357_v30 }
 0x102   : > { %v1575_v27 = vpop.eup %1574 }
 0x103   : > { %384 = vrot.lane.b32.xlu0 %v1575_v27, %s1651_s7  ;;  %v1577_v28 = vpop.eup %1576 }
 0x104   : > { %v1579_v31 = vpop.eup %1578 }
 0x105   : > { %v374_v32 = vadd.f32 1.0, %v1579_v31  ;;  %v1581_v33 = vpop.eup %1580 }
 0x106   : > { %v480_v34 = vadd.f32 1.0, %v1581_v33 }
 0x107   : > { %490 = vrot.lane.b32.xlu0 %v1577_v28, %s1651_s7  ;;  %1582 = vrcp.f32 %v374_v32 }
 0x108   : > { %1584 = vrcp.f32 %v480_v34 }
 0x111   : > { %v1583_v35 = vpop.eup %1582 }
 0x112   : > { %v1585_v38 = vpop.eup %1584  ;;  %v382_v42 = vmul.f32 %v1583_v35, %v380_v41 }
 0x113   : > { %v488_v46 = vmul.f32 %v1585_v38, %v486_v43 }
 0x175   : > { %v385_v36 = vpop.permute.xlu0 %384 }
 0x176   : > { %v387_v37 = vmul.f32 %v1583_v35, %v385_v36 }
 0x178   : > { %389 = vrot.lane.b32.xlu0 %v387_v37, %s1650_s6 }
 0x179   : > { %v491_v39 = vpop.permute.xlu0 %490 }
 0x17a   : > { %v493_v40 = vmul.f32 %v1585_v38, %v491_v39 }
 0x17c   : > { %495 = vrot.lane.b32.xlu1 %v493_v40, %s1650_s6 }
 0x1ea   : > { %v390_v44 = vpop.permute.xlu0 %389 }
 0x1eb   : > { %v392_v45 = vadd.f32 %v390_v44, %v382_v42 }
 0x1ed   : > { %1586 = vtanh.f32 %v392_v45 }
 0x1ee   : > { %v496_v47 = vpop.permute.xlu1 %495 }
 0x1ef   : > { %v498_v48 = vadd.f32 %v496_v47, %v488_v46 }
 0x1f1   : > { %1588 = vtanh.f32 %v498_v48 }
 0x1f7   : > { %v1587_v49 = vpop.eup %1586 }
 0x1f8   : > { %395 = vrot.lane.b32.xlu0 %v1587_v49, %s1651_s7 }
 0x1fb   : > { %v1589_v50 = vpop.eup %1588 }
 0x1fc   : > { %501 = vrot.lane.b32.xlu1 %v1589_v50, %s1651_s7  ;;  %v1370_v50 = vld [vmem:[%s1699_s30 + $0x8] sm:$0xff] }
 0x26a   : > { %v396_v51 = vpop.permute.xlu0 %395 }
 0x26b   : > { %v398_v52 = vmul.f32 %v1583_v35, %v396_v51 }
 0x26d   : > { %506 = vrot.lane.b32.xlu0 %v398_v52, %s1650_s6 }
 0x26e   : > { %v502_v53 = vpop.permute.xlu1 %501 }
 0x26f   : > { %v504_v54 = vmul.f32 %v1585_v38, %v502_v53 }
 0x271   : > { %516 = vrot.lane.b32.xlu1 %v504_v54, %s1650_s6  ;;  %511 = vrot.lane.b32.xlu0 %v392_v45, %s1652_s9 }
 0x275   : > { %521 = vrot.lane.b32.xlu1 %v498_v48, %s1652_s9 }
 0x2df   : > { %v507_v55 = vpop.permute.xlu0 %506 }
 0x2e0   : > { %509 = vst.msk [vmem:[#allocation2] sm:$0xff] %vm296_vm2, %v507_v55  ;;  %525 = vst.msk [vmem:[%s1704_s8] sm:$0xff] %vm296_vm2, %v507_v55 }
 0x2e3   : > { %v517_v56 = vpop.permute.xlu1 %516  ;;  %v512_v57 = vpop.permute.xlu0 %511 }
 0x2e4   : > { %519 = vst.msk [vmem:[#allocation4] sm:$0xff] %vm296_vm2, %v517_v56  ;;  %1358 = vst.msk [vmem:[%s1709_s11 + $0x18] sm:$0xff] %vm296_vm2, %v517_v56 }
 0x2e5   : > { %514 = vst.msk [vmem:[#allocation3] sm:$0xff] %vm296_vm2, %v512_v57 }
 0x2e7   : > { %v522_v58 = vpop.permute.xlu1 %521  ;;  %v530_v59 = vld [vmem:[#allocation2] sm:$0xff] }
 0x2e8   : > { %524 = vst.msk [vmem:[#allocation5] sm:$0xff] %vm296_vm2, %v522_v58  ;;  %1454 = vmatmul.mubr.msk.f32.vlgmr.msra.gmra.mrb[2].mxu0 %vm296_vm2, %v530_v59 }
 0x2e9   : > { %1537 = vmatpush3.bf16.msra.mxu0 %v1721_v5  ;;  %1475 = vmatprep.mubr.msk.f32.mxu0 %vm1648_vm1, %v1649_v10 }
 0x2ea   : > { %1538 = vmatprep.subr.bf16.mxu0 %v1647_v4 }
 0x2eb   : > { %v636_v60 = vld [vmem:[#allocation4] sm:$0xff] }
 0x2ec   : > { %1465 = vmatmul.mubr.msk.f32.vlgmr.msra.gmra.mrb[2].mxu1 %vm296_vm2, %v636_v60  ;;  %v531_v11 = vld [vmem:[#allocation3] sm:$0xff] }
 0x2ed   : > { %1540 = vmatpush3.bf16.msra.mxu0 %v1746_v13  ;;  %1543 = vmatpush3.bf16.msra.mxu1 %v1733_v9 }
 0x2ee   : > { %1544 = vmatprep.subr.bf16.mxu1 %v1647_v4  ;;  %1486 = vmatprep.mubr.msk.f32.mxu1 %vm1648_vm1, %v1649_v10 }
 0x2ef   : > { %1547 = vmatprep.subr.bf16.mxu0 %v1647_v4  ;;  %v637_v12 = vld [vmem:[#allocation5] sm:$0xff] }
 0x2f1   : > { %1546 = vmatpush3.bf16.msra.mxu1 %v1750_v15 }
 0x2f2   : > { %1553 = vmatprep.subr.bf16.mxu1 %v1647_v4 }
 0x3bb   : > { %v601_v62 = vpop.f32.mrb[2].mxu0 }
 0x3bc   : > { %v605_v63 = vadd.f32 %v1359_v61, %v601_v62  ;;  %v1455_v0 = vpop.f32.mrb[3].mxu0 }
 0x3be   : > { %1590 = vtanh.f32 %v605_v63  ;;  %v1361_v14 = vmul.f32 -1.442695, %v605_v63 }
 0x3bf   : > { %v707_v2 = vpop.f32.mrb[2].mxu1 }
 0x3c0   : > { %v711_v3 = vadd.f32 %v1362_v1, %v707_v2  ;;  %v1466_v6 = vpop.f32.mrb[3].mxu1 }
 0x3c2   : > { %1592 = vtanh.f32 %v711_v3  ;;  %v1364_v16 = vmul.f32 -1.442695, %v711_v3 }
 0x3c3   : > { %1594 = vpow2.f32 %v1361_v14 }
 0x3c4   : > { %1596 = vpow2.f32 %v1364_v16 }
 0x3c8   : > { %v1591_v7 = vpop.eup %1590 }
 0x3c9   : > { %619 = vrot.lane.b32.xlu0 %v1591_v7, %s1651_s7 }
 0x3cc   : > { %v1593_v8 = vpop.eup %1592 }
 0x3cd   : > { %725 = vrot.lane.b32.xlu1 %v1593_v8, %s1651_s7  ;;  %614 = vrot.lane.b32.xlu0 %v531_v11, %s1650_s6  ;;  %v1595_v17 = vpop.eup %1594 }
 0x3ce   : > { %v609_v18 = vadd.f32 1.0, %v1595_v17  ;;  %v1597_v19 = vpop.eup %1596 }
 0x3cf   : > { %v715_v20 = vadd.f32 1.0, %v1597_v19 }
 0x3d0   : > { %1598 = vrcp.f32 %v609_v18 }
 0x3d1   : > { %720 = vrot.lane.b32.xlu1 %v637_v12, %s1650_s6  ;;  %1600 = vrcp.f32 %v715_v20 }
 0x3da   : > { %v1599_v21 = vpop.eup %1598 }
 0x3db   : > { %v1601_v24 = vpop.eup %1600 }
 0x43b   : > { %v620_v22 = vpop.permute.xlu0 %619 }
 0x43c   : > { %v622_v23 = vmul.f32 %v1599_v21, %v620_v22 }
 0x43e   : > { %624 = vrot.lane.b32.xlu0 %v622_v23, %s1650_s6 }
 0x43f   : > { %v726_v25 = vpop.permute.xlu1 %725  ;;  %v615_v27 = vpop.permute.xlu0 %614 }
 0x440   : > { %v728_v26 = vmul.f32 %v1601_v24, %v726_v25  ;;  %v617_v28 = vmul.f32 %v1599_v21, %v615_v27  ;;  %v1375_v27 = vld [vmem:[%s1694_s26 + $0x18] sm:$0xff] }
 0x442   : > { %730 = vrot.lane.b32.xlu1 %v728_v26, %s1650_s6 }
 0x443   : > { %v721_v29 = vpop.permute.xlu1 %720 }
 0x444   : > { %v723_v32 = vmul.f32 %v1601_v24, %v721_v29 }
 0x4b0   : > { %v625_v30 = vpop.permute.xlu0 %624 }
 0x4b1   : > { %v627_v31 = vadd.f32 %v625_v30, %v617_v28 }
 0x4b3   : > { %1602 = vtanh.f32 %v627_v31 }
 0x4b4   : > { %v731_v33 = vpop.permute.xlu1 %730 }
 0x4b5   : > { %v733_v34 = vadd.f32 %v731_v33, %v723_v32 }
 0x4b7   : > { %1604 = vtanh.f32 %v733_v34 }
 0x4bd   : > { %v1603_v35 = vpop.eup %1602 }
 0x4be   : > { %630 = vrot.lane.b32.xlu0 %v1603_v35, %s1651_s7 }
 0x4c1   : > { %v1605_v36 = vpop.eup %1604 }
 0x4c2   : > { %736 = vrot.lane.b32.xlu1 %v1605_v36, %s1651_s7 }
 0x530   : > { %v631_v37 = vpop.permute.xlu0 %630 }
 0x531   : > { %v633_v38 = vmul.f32 %v1599_v21, %v631_v37 }
 0x533   : > { %741 = vrot.lane.b32.xlu0 %v633_v38, %s1650_s6 }
 0x534   : > { %v737_v39 = vpop.permute.xlu1 %736 }
 0x535   : > { %v739_v40 = vmul.f32 %v1601_v24, %v737_v39 }
 0x537   : > { %751 = vrot.lane.b32.xlu1 %v739_v40, %s1650_s6  ;;  %746 = vrot.lane.b32.xlu0 %v627_v31, %s1652_s9  ;;  %v1106_v31 = vld [vmem:[%s1699_s30] sm:$0xff] }
 0x53b   : > { %756 = vrot.lane.b32.xlu1 %v733_v34, %s1652_s9 }
 0x5a5   : > { %v742_v41 = vpop.permute.xlu0 %741 }
 0x5a6   : > { %744 = vst.msk [vmem:[#allocation2] sm:$0xff] %vm296_vm2, %v742_v41  ;;  %1365 = vst.msk [vmem:[%s1704_s8 + $0x8] sm:$0xff] %vm296_vm2, %v742_v41 }
 0x5a9   : > { %v752_v42 = vpop.permute.xlu1 %751  ;;  %v747_v43 = vpop.permute.xlu0 %746 }
 0x5aa   : > { %754 = vst.msk [vmem:[#allocation4] sm:$0xff] %vm296_vm2, %v752_v42  ;;  %1366 = vst.msk [vmem:[%s1709_s11 + $0x10] sm:$0xff] %vm296_vm2, %v752_v42 }
 0x5ab   : > { %749 = vst.msk [vmem:[#allocation3] sm:$0xff] %vm296_vm2, %v747_v43 }
 0x5ad   : > { %v757_v44 = vpop.permute.xlu1 %756  ;;  %v766_v45 = vld [vmem:[#allocation2] sm:$0xff] }
 0x5ae   : > { %759 = vst.msk [vmem:[#allocation5] sm:$0xff] %vm296_vm2, %v757_v44  ;;  %1476 = vmatmul.mubr.msk.f32.vlgmr.msra.gmra.mrb[4].mxu0 %vm296_vm2, %v766_v45 }
 0x5af   : > { %1549 = vmatpush3.bf16.msra.mxu0 %v1721_v5  ;;  %1497 = vmatprep.mubr.msk.f32.mxu0 %vm1648_vm1, %v1649_v10  ;;  %v1367_v5 = vld [vmem:[%s1694_s26 + $0x10] sm:$0xff] }
 0x5b0   : > { %1550 = vmatprep.subr.bf16.mxu0 %v1647_v4 }
 0x5b1   : > { %v872_v46 = vld [vmem:[#allocation4] sm:$0xff] }
 0x5b2   : > { %1487 = vmatmul.mubr.msk.f32.vlgmr.msra.gmra.mrb[4].mxu1 %vm296_vm2, %v872_v46 }
 0x5b3   : > { %1552 = vmatpush3.bf16.msra.mxu0 %v1746_v13  ;;  %1555 = vmatpush3.bf16.msra.mxu1 %v1733_v9 }
 0x5b4   : > { %1556 = vmatprep.subr.bf16.mxu1 %v1647_v4  ;;  %1508 = vmatprep.mubr.msk.f32.mxu1 %vm1648_vm1, %v1649_v10  ;;  %v767_v4 = vld [vmem:[#allocation3] sm:$0xff] }
 0x5b5   : > { %v873_v10 = vld [vmem:[#allocation5] sm:$0xff] }
 0x5b7   : > { %1558 = vmatpush3.bf16.msra.mxu1 %v1750_v15 }
 0x681   : > { %v837_v47 = vpop.f32.mrb[4].mxu0 }
 0x682   : > { %v841_v48 = vadd.f32 %v1367_v5, %v837_v47  ;;  %v1477_v49 = vpop.f32.mrb[5].mxu0 }
 0x684   : > { %1606 = vtanh.f32 %v841_v48  ;;  %v1369_v15 = vmul.f32 -1.442695, %v841_v48 }
 0x685   : > { %v943_v51 = vpop.f32.mrb[4].mxu1 }
 0x686   : > { %v947_v52 = vadd.f32 %v1370_v50, %v943_v51  ;;  %v1488_v53 = vpop.f32.mrb[5].mxu1 }
 0x688   : > { %1608 = vtanh.f32 %v947_v52  ;;  %v1372_v54 = vmul.f32 -1.442695, %v947_v52 }
 0x689   : > { %1610 = vpow2.f32 %v1369_v15 }
 0x68a   : > { %1612 = vpow2.f32 %v1372_v54 }
 0x68e   : > { %v1607_v13 = vpop.eup %1606 }
 0x68f   : > { %855 = vrot.lane.b32.xlu0 %v1607_v13, %s1651_s7 }
 0x692   : > { %v1609_v9 = vpop.eup %1608 }
 0x693   : > { %961 = vrot.lane.b32.xlu1 %v1609_v9, %s1651_s7  ;;  %850 = vrot.lane.b32.xlu0 %v767_v4, %s1650_s6  ;;  %v1611_v55 = vpop.eup %1610 }
 0x694   : > { %v845_v56 = vadd.f32 1.0, %v1611_v55  ;;  %v1613_v57 = vpop.eup %1612 }
 0x695   : > { %v951_v58 = vadd.f32 1.0, %v1613_v57 }
 0x696   : > { %1614 = vrcp.f32 %v845_v56 }
 0x697   : > { %956 = vrot.lane.b32.xlu1 %v873_v10, %s1650_s6  ;;  %1616 = vrcp.f32 %v951_v58 }
 0x6a0   : > { %v1615_v59 = vpop.eup %1614 }
 0x6a1   : > { %v1617_v62 = vpop.eup %1616 }
 0x701   : > { %v856_v60 = vpop.permute.xlu0 %855 }
 0x702   : > { %v858_v61 = vmul.f32 %v1615_v59, %v856_v60 }
 0x704   : > { %860 = vrot.lane.b32.xlu0 %v858_v61, %s1650_s6 }
 0x705   : > { %v962_v63 = vpop.permute.xlu1 %961  ;;  %v851_v1 = vpop.permute.xlu0 %850 }
 0x706   : > { %v964_v0 = vmul.f32 %v1617_v62, %v962_v63  ;;  %v853_v2 = vmul.f32 %v1615_v59, %v851_v1 }
 0x708   : > { %966 = vrot.lane.b32.xlu1 %v964_v0, %s1650_s6 }
 0x709   : > { %v957_v3 = vpop.permute.xlu1 %956 }
 0x70a   : > { %v959_v8 = vmul.f32 %v1617_v62, %v957_v3 }
 0x776   : > { %v861_v6 = vpop.permute.xlu0 %860 }
 0x777   : > { %v863_v7 = vadd.f32 %v861_v6, %v853_v2 }
 0x779   : > { %1618 = vtanh.f32 %v863_v7 }
 0x77a   : > { %v967_v11 = vpop.permute.xlu1 %966 }
 0x77b   : > { %v969_v12 = vadd.f32 %v967_v11, %v959_v8 }
 0x77d   : > { %1620 = vtanh.f32 %v969_v12 }
 0x783   : > { %v1619_v14 = vpop.eup %1618 }
 0x784   : > { %866 = vrot.lane.b32.xlu0 %v1619_v14, %s1651_s7 }
 0x787   : > { %v1621_v16 = vpop.eup %1620 }
 0x788   : > { %972 = vrot.lane.b32.xlu1 %v1621_v16, %s1651_s7 }
 0x7f6   : > { %v867_v17 = vpop.permute.xlu0 %866 }
 0x7f7   : > { %v869_v18 = vmul.f32 %v1615_v59, %v867_v17 }
 0x7f9   : > { %977 = vrot.lane.b32.xlu0 %v869_v18, %s1650_s6 }
 0x7fa   : > { %v973_v19 = vpop.permute.xlu1 %972 }
 0x7fb   : > { %v975_v20 = vmul.f32 %v1617_v62, %v973_v19 }
 0x7fd   : > { %987 = vrot.lane.b32.xlu1 %v975_v20, %s1650_s6  ;;  %982 = vrot.lane.b32.xlu0 %v863_v7, %s1652_s9 }
 0x801   : > { %992 = vrot.lane.b32.xlu1 %v969_v12, %s1652_s9 }
 0x86b   : > { %v978_v21 = vpop.permute.xlu0 %977 }
 0x86c   : > { %980 = vst.msk [vmem:[#allocation2] sm:$0xff] %vm296_vm2, %v978_v21  ;;  %1373 = vst.msk [vmem:[%s1704_s8 + $0x10] sm:$0xff] %vm296_vm2, %v978_v21 }
 0x86f   : > { %v988_v22 = vpop.permute.xlu1 %987  ;;  %v983_v23 = vpop.permute.xlu0 %982 }
 0x870   : > { %990 = vst.msk [vmem:[#allocation4] sm:$0xff] %vm296_vm2, %v988_v22  ;;  %1374 = vst.msk [vmem:[%s1709_s11 + $0x8] sm:$0xff] %vm296_vm2, %v988_v22 }
 0x871   : > { %985 = vst.msk [vmem:[#allocation3] sm:$0xff] %vm296_vm2, %v983_v23 }
 0x873   : > { %v993_v24 = vpop.permute.xlu1 %992  ;;  %v1002_v25 = vld [vmem:[#allocation2] sm:$0xff] }
 0x874   : > { %995 = vst.msk [vmem:[#allocation5] sm:$0xff] %vm296_vm2, %v993_v24  ;;  %1498 = vmatmul.mubr.msk.f32.vlgmr.msra.gmra.mrb[6].mxu0 %vm296_vm2, %v1002_v25 }
 0x877   : > { %v1107_v26 = vld [vmem:[#allocation4] sm:$0xff] }
 0x878   : > { %1509 = vmatmul.mubr.msk.f32.vlgmr.msra.gmra.mrb[6].mxu1 %vm296_vm2, %v1107_v26  ;;  %v1003_v37 = vld [vmem:[#allocation3] sm:$0xff] }
 0x87b   : > { %v1108_v38 = vld [vmem:[#allocation5] sm:$0xff] }
 0x947   : > { %v1073_v28 = vpop.f32.mrb[6].mxu0 }
 0x948   : > { %v1077_v29 = vadd.f32 %v1375_v27, %v1073_v28  ;;  %v1499_v30 = vpop.f32.mrb[7].mxu0 }
 0x94a   : > { %1622 = vtanh.f32 %v1077_v29  ;;  %v1377_v39 = vmul.f32 -1.442695, %v1077_v29 }
 0x94b   : > { %v1178_v32 = vpop.f32.mrb[6].mxu1 }
 0x94c   : > { %v1182_v33 = vadd.f32 %v1178_v32, %v1106_v31  ;;  %v1510_v34 = vpop.f32.mrb[7].mxu1 }
 0x94e   : > { %1624 = vtanh.f32 %v1182_v33  ;;  %v1379_v40 = vmul.f32 -1.442695, %v1182_v33 }
 0x94f   : > { %1626 = vpow2.f32 %v1377_v39 }
 0x950   : > { %1628 = vpow2.f32 %v1379_v40 }
 0x954   : > { %v1623_v35 = vpop.eup %1622 }
 0x955   : > { %1091 = vrot.lane.b32.xlu0 %v1623_v35, %s1651_s7 }
 0x958   : > { %v1625_v36 = vpop.eup %1624 }
 0x959   : > { %1196 = vrot.lane.b32.xlu1 %v1625_v36, %s1651_s7  ;;  %1086 = vrot.lane.b32.xlu0 %v1003_v37, %s1650_s6  ;;  %v1627_v41 = vpop.eup %1626 }
 0x95a   : > { %v1081_v42 = vadd.f32 1.0, %v1627_v41  ;;  %v1629_v43 = vpop.eup %1628 }
 0x95b   : > { %v1186_v44 = vadd.f32 1.0, %v1629_v43 }
 0x95c   : > { %1630 = vrcp.f32 %v1081_v42 }
 0x95d   : > { %1191 = vrot.lane.b32.xlu1 %v1108_v38, %s1650_s6  ;;  %1632 = vrcp.f32 %v1186_v44 }
 0x966   : > { %v1631_v45 = vpop.eup %1630 }
 0x967   : > { %v1633_v47 = vpop.eup %1632 }
 0x9c7   : > { %v1092_v46 = vpop.permute.xlu0 %1091 }
 0x9c8   : > { %v1094_v5 = vmul.f32 %v1631_v45, %v1092_v46 }
 0x9ca   : > { %1096 = vrot.lane.b32.xlu0 %v1094_v5, %s1650_s6 }
 0x9cb   : > { %v1197_v48 = vpop.permute.xlu1 %1196  ;;  %v1087_v50 = vpop.permute.xlu0 %1086 }
 0x9cc   : > { %v1199_v49 = vmul.f32 %v1633_v47, %v1197_v48  ;;  %v1089_v51 = vmul.f32 %v1631_v45, %v1087_v50 }
 0x9ce   : > { %1201 = vrot.lane.b32.xlu1 %v1199_v49, %s1650_s6 }
 0x9cf   : > { %v1192_v52 = vpop.permute.xlu1 %1191 }
 0x9d0   : > { %v1194_v9 = vmul.f32 %v1633_v47, %v1192_v52 }
 0xa3c   : > { %v1097_v53 = vpop.permute.xlu0 %1096 }
 0xa3d   : > { %v1099_v13 = vadd.f32 %v1097_v53, %v1089_v51 }
 0xa3f   : > { %1634 = vtanh.f32 %v1099_v13 }
 0xa40   : > { %v1202_v4 = vpop.permute.xlu1 %1201 }
 0xa41   : > { %v1204_v10 = vadd.f32 %v1202_v4, %v1194_v9 }
 0xa43   : > { %1636 = vtanh.f32 %v1204_v10 }
 0xa49   : > { %v1635_v15 = vpop.eup %1634 }
 0xa4a   : > { %1102 = vrot.lane.b32.xlu0 %v1635_v15, %s1651_s7 }
 0xa4d   : > { %v1637_v54 = vpop.eup %1636 }
 0xa4e   : > { %1207 = vrot.lane.b32.xlu1 %v1637_v54, %s1651_s7 }
 0xa52   : > { %1217 = vrot.lane.b32.xlu1 %v1099_v13, %s1652_s9 }
 0xa56   : > { %1227 = vrot.lane.b32.xlu1 %v1204_v10, %s1652_s9 }
 0xabc   : > { %v1103_v55 = vpop.permute.xlu0 %1102 }
 0xabd   : > { %v1105_v56 = vmul.f32 %v1631_v45, %v1103_v55 }
 0xabf   : > { %1212 = vrot.lane.b32.xlu0 %v1105_v56, %s1650_s6 }
 0xac0   : > { %v1208_v57 = vpop.permute.xlu1 %1207 }
 0xac1   : > { %v1210_v58 = vmul.f32 %v1633_v47, %v1208_v57 }
 0xac3   : > { %1222 = vrot.lane.b32.xlu0 %v1210_v58, %s1650_s6 }
 0xac4   : > { %v1218_v59 = vpop.permute.xlu1 %1217 }
 0xac5   : > { %1220 = vst.msk [vmem:[#allocation3] sm:$0xff] %vm296_vm2, %v1218_v59 }
 0xac8   : > { %v1228_v60 = vpop.permute.xlu1 %1227 }
 0xac9   : > { %1230 = vst.msk [vmem:[#allocation5] sm:$0xff] %vm296_vm2, %v1228_v60 }
 0xb31   : > { %v1213_v61 = vpop.permute.xlu0 %1212 }
 0xb32   : > { %1215 = vst.msk [vmem:[#allocation2] sm:$0xff] %vm296_vm2, %v1213_v61  ;;  %1380 = vst.msk [vmem:[%s1704_s8 + $0x18] sm:$0xff] %vm296_vm2, %v1213_v61 }
 0xb35   : > { %v1223_v62 = vpop.permute.xlu0 %1222 }
 0xb36   : > { %1225 = vst.msk [vmem:[#allocation4] sm:$0xff] %vm296_vm2, %v1223_v62  ;;  %1233 = vst.msk [vmem:[%s1709_s11] sm:$0xff] %vm296_vm2, %v1223_v62 }
 0xb37 PF: > { %s16_s18 = sadd.s32 1, %s1644_s18  }
 0xb38   : > { %p13_p6 = scmp.ge.s32.totalorder %s16_s18, 4  }
 0xb3a   :  { %15 = sbr.rel (!%p13_p6) target bundleno = 1 (0x1), region = 97 }

// kernel: sequence_encoder_forward.7
= control target key start
LH: loop header
LB: loop body
LE: loop exit
PB: predicated region body
PF: predicated region fallthrough
CT: control target
= control target key end

     0   :  { %s896_s12 = smov 0   ;;  %s997_s0 = inlined_call_operand.vmem [shape: f32[64,128], index: 0, kind: input, shape index: {}]   ;;  %s998_s1 = inlined_call_operand.vmem [shape: f32[8,128], index: 1, kind: input, shape index: {}]   ;;  %s999_s2 = inlined_call_operand.vmem [shape: f32[32,128], index: 2, kind: input, shape index: {}]   ;;  %s1000_s3 = inlined_call_operand.vmem [shape: f32[8,64], index: 3, kind: output, shape index: {}]  }
   0x1 LB: > { %s902_s13 = sadd.s32 4294967295, %s865_s12   ;;  %p695_p0 = scmp.ge.s32.totalorder %s865_s12, 1  ;;  %s865_s12 = sphi %s896_s12, %s13_s12  }
   0x2   : > { %p133_p1 = scmp.lt.s32.totalorder %s865_s12, 3 }
   0x4   : > { %p134_p2 = pnand %p695_p0, %p133_p1 }
   0x5   : > { %s696_s14 = sshll.u32 (!%p134_p2), %s902_s13, 2  ;;  %p698_p4 = scmp.ne.s32.totalorder (!%p134_p2), %s902_s13, 0 }
   0x6   : > { %137 = sbr.rel (%p134_p2) target bundleno = 3112 (0xc28), region = 32  ;;  %p153_p3 = scmp.lt.s32.totalorder (!%p134_p2), %s696_s14, 7 }
   0xd   : > { %s1002_s14 = smov (!%p153_p3, %s696_s14), 7  ;;  %161 = sbr.rel (%p698_p4) target bundleno = 20 (0x14), region = 36 }
   0xe   : > { %s697_s15 = sshll.u32 %s1002_s14, 3  ;;  %vm162_vm0 = vcmask (!%p698_p4), 261120   ;;  %v867_v0 = vmov (!%p698_p4), 0.0  }
   0xf   : > { %s910_s18 = scalar_lea.vmem %s997_s0, %s697_s15  ;;  %163 = vst.msk [vmem:[#allocation2] sm:$0xff] (!%p698_p4), %vm162_vm0, %v867_v0  ;;  %164 = vst.msk [vmem:[#allocation3] sm:$0xff] (!%p698_p4), %vm162_vm0, %v867_v0 }
  0x14 PF: > { %v165_v1 = vld [vmem:[%s999_s2] sm:$0xff]  ;;  %v166_v2 = vld [vmem:[%s999_s2 + $0x8] sm:$0xff]  ;;  %v167_v3 = vld [vmem:[%s999_s2 + $0x10] sm:$0xff]  ;;  %v868_v4 = vmov 0.0|0.0   ;;  %vm869_vm1 = vmmov 0   ;;  %v870_v7 = vmov 0.0  }
  0x15   : > { %778 = vmatprep.subr.bf16.mxu0 %v868_v4  ;;  %v923_v5 = vpack.c.bf16 %v166_v2, %v165_v1  ;;  %v168_v6 = vld [vmem:[%s999_s2 + $0x18] sm:$0xff]  ;;  %742 = vmatprep.mubr.msk.f32.mxu0 %vm869_vm1, %v870_v7  ;;  %vm172_vm2 = vcmask 261120   ;;  %v169_v10 = vld [vmem:[%s910_s18] sm:$0xff]  ;;  %s871_s27 = smov 64   ;;  %s872_s28 = smov 32   ;;  %v701_v33 = vld [vmem:[%s910_s18 + $0x8] sm:$0xff] }
  0x16   : > { %784 = vmatprep.subr.bf16.mxu1 %v868_v4  ;;  %753 = vmatprep.mubr.msk.f32.mxu1 %vm869_vm1, %v870_v7  ;;  %v782_v8 = vpack.c.bf16 %v168_v6, %v167_v3  ;;  %v170_v9 = vld [vmem:[#allocation2] sm:$0xff]  ;;  %v171_v15 = vld [vmem:[#allocation3] sm:$0xff]  ;;  %s873_s29 = smov 96   ;;  %v704_v55 = vld [vmem:[%s910_s18 + $0x10] sm:$0xff]  ;;  %p710_p5 = scmp.ne.s32.totalorder %s902_s13, 1 }
  0x17   : > { %780 = vmatpush3.bf16.msra.mxu0 %v923_v5  ;;  %786 = vmatpush3.bf16.msra.mxu1 %v923_v5  ;;  %s874_s5 = smov (!%p710_p5), 64   ;;  %s875_s6 = smov (!%p710_p5), 96   ;;  %vm662_vm3 = vcmask (!%p710_p5), 523520  }
  0x18   : > { %781 = vmatprep.subr.bf16.mxu0 %v868_v4  ;;  %787 = vmatprep.subr.bf16.mxu1 %v868_v4 }
  0x1b   : > { %783 = vmatpush3.bf16.msra.mxu0 %v782_v8  ;;  %789 = vmatpush3.bf16.msra.mxu1 %v782_v8 }
  0x1c   : > { %790 = vmatprep.subr.bf16.mxu0 %v868_v4  ;;  %796 = vmatprep.subr.bf16.mxu1 %v868_v4 }
  0x1e   : > { %743 = vmatmul.mubr.msk.f32.vlgmr.msra.gmra.mrb[0].mxu0 %vm172_vm2, %v170_v9 }
  0x1f   : > { %792 = vmatpush3.bf16.msra.mxu0 %v923_v5  ;;  %764 = vmatprep.mubr.msk.f32.mxu0 %vm869_vm1, %v870_v7 }
  0x20   : > { %793 = vmatprep.subr.bf16.mxu0 %v868_v4 }
  0x23   : > { %795 = vmatpush3.bf16.msra.mxu0 %v782_v8 }
  0xf1   : > { %v242_v11 = vpop.f32.mrb[0].mxu0 }
  0xf2   : > { %v246_v12 = vadd.f32 %v242_v11, %v169_v10  ;;  %v744_v13 = vpop.f32.mrb[1].mxu0 }
  0xf3   : > { %v707_v13 = vld [vmem:[%s910_s18 + $0x18] sm:$0xff] }
  0xf4   : > { %819 = vtanh.f32 %v246_v12  ;;  %v700_v16 = vmul.f32 -1.442695, %v246_v12 }
  0xf6   : > { %821 = vpow2.f32 %v700_v16 }
  0xfe   : > { %v820_v14 = vpop.eup %819 }
  0xff   : > { %260 = vrot.lane.b32.xlu0 %v820_v14, %s871_s27 }
 0x100   : > { %v822_v17 = vpop.eup %821 }
 0x101   : > { %v250_v18 = vadd.f32 1.0, %v822_v17 }
 0x103   : > { %255 = vrot.lane.b32.xlu0 %v171_v15, %s872_s28  ;;  %823 = vrcp.f32 %v250_v18 }
 0x10d   : > { %v824_v19 = vpop.eup %823 }
 0x171   : > { %v261_v20 = vpop.permute.xlu0 %260 }
 0x172   : > { %v263_v21 = vmul.f32 %v824_v19, %v261_v20 }
 0x174   : > { %265 = vrot.lane.b32.xlu1 %v263_v21, %s872_s28 }
 0x175   : > { %v256_v22 = vpop.permute.xlu0 %255 }
 0x176   : > { %v258_v23 = vmul.f32 %v824_v19, %v256_v22 }
 0x1e6   : > { %v266_v24 = vpop.permute.xlu1 %265 }
 0x1e7   : > { %v268_v25 = vadd.f32 %v266_v24, %v258_v23 }
 0x1e9   : > { %825 = vtanh.f32 %v268_v25 }
 0x1f3   : > { %v826_v26 = vpop.eup %825 }
 0x1f4   : > { %271 = vrot.lane.b32.xlu1 %v826_v26, %s871_s27 }
 0x1f8   : > { %281 = vrot.lane.b32.xlu1 %v268_v25, %s873_s29 }
 0x266   : > { %v272_v27 = vpop.permute.xlu1 %271 }
 0x267   : > { %v274_v28 = vmul.f32 %v824_v19, %v272_v27 }
 0x269   : > { %276 = vrot.lane.b32.xlu0 %v274_v28, %s872_s28 }
 0x26a   : > { %v282_v29 = vpop.permute.xlu1 %281 }
 0x26b   : > { %284 = vst.msk [vmem:[#allocation3] sm:$0xff] %vm172_vm2, %v282_v29 }
 0x272   : > { %v288_v30 = vld [vmem:[#allocation3] sm:$0xff] }
 0x273   : > { %371 = vrot.lane.b32.xlu1 %v288_v30, %s872_s28 }
 0x2db   : > { %v277_v31 = vpop.permute.xlu0 %276 }
 0x2dc   : > { %279 = vst.msk [vmem:[#allocation2] sm:$0xff] %vm172_vm2, %v277_v31 }
 0x2e3   : > { %v287_v32 = vld [vmem:[#allocation2] sm:$0xff] }
 0x2e4   : > { %754 = vmatmul.mubr.msk.f32.vlgmr.msra.gmra.mrb[0].mxu1 %vm172_vm2, %v287_v32 }
 0x2e5   : > { %798 = vmatpush3.bf16.msra.mxu1 %v923_v5  ;;  %775 = vmatprep.mubr.msk.f32.mxu1 %vm869_vm1, %v870_v7  ;;  %v372_v44 = vpop.permute.xlu1 %371 }
 0x2e6   : > { %799 = vmatprep.subr.bf16.mxu1 %v868_v4 }
 0x2e9   : > { %801 = vmatpush3.bf16.msra.mxu1 %v782_v8 }
 0x3b7   : > { %v358_v34 = vpop.f32.mrb[0].mxu1 }
 0x3b8   : > { %v362_v35 = vadd.f32 %v701_v33, %v358_v34  ;;  %v755_v36 = vpop.f32.mrb[1].mxu1  ;;  %v639_v33 = vld [vmem:[%s998_s1] sm:$0xff] (!%p710_p5) }
 0x3ba   : > { %827 = vtanh.f32 %v362_v35  ;;  %v703_v38 = vmul.f32 -1.442695, %v362_v35  ;;  %v711_v35 = vmul.f32 (!%p710_p5), -1.442695, %v639_v33 }
 0x3bc   : > { %829 = vpow2.f32 %v703_v38 }
 0x3c4   : > { %v828_v37 = vpop.eup %827 }
 0x3c5   : > { %376 = vrot.lane.b32.xlu0 %v828_v37, %s871_s27 }
 0x3c6   : > { %v830_v39 = vpop.eup %829 }
 0x3c7   : > { %v366_v40 = vadd.f32 1.0, %v830_v39 }
 0x3c9   : > { %831 = vrcp.f32 %v366_v40 }
 0x3d3   : > { %v832_v41 = vpop.eup %831 }
 0x3d4   : > { %v374_v45 = vmul.f32 %v832_v41, %v372_v44 }
 0x437   : > { %v377_v42 = vpop.permute.xlu0 %376 }
 0x438   : > { %v379_v43 = vmul.f32 %v832_v41, %v377_v42 }
 0x43a   : > { %381 = vrot.lane.b32.xlu0 %v379_v43, %s872_s28 }
 0x4ac   : > { %v382_v46 = vpop.permute.xlu0 %381 }
 0x4ad   : > { %v384_v47 = vadd.f32 %v382_v46, %v374_v45 }
 0x4af   : > { %833 = vtanh.f32 %v384_v47 }
 0x4b9   : > { %v834_v48 = vpop.eup %833 }
 0x4ba   : > { %387 = vrot.lane.b32.xlu1 %v834_v48, %s871_s27 }
 0x4be   : > { %397 = vrot.lane.b32.xlu1 %v384_v47, %s873_s29 }
 0x52c   : > { %v388_v49 = vpop.permute.xlu1 %387 }
 0x52d   : > { %v390_v50 = vmul.f32 %v832_v41, %v388_v49 }
 0x52f   : > { %392 = vrot.lane.b32.xlu0 %v390_v50, %s872_s28 }
 0x530   : > { %v398_v51 = vpop.permute.xlu1 %397 }
 0x531   : > { %400 = vst.msk [vmem:[#allocation3] sm:$0xff] %vm172_vm2, %v398_v51 }
 0x538   : > { %v404_v52 = vld [vmem:[#allocation3] sm:$0xff] }
 0x539   : > { %487 = vrot.lane.b32.xlu1 %v404_v52, %s872_s28 }
 0x5a1   : > { %v393_v53 = vpop.permute.xlu0 %392 }
 0x5a2   : > { %395 = vst.msk [vmem:[#allocation2] sm:$0xff] %vm172_vm2, %v393_v53 }
 0x5a9   : > { %v403_v54 = vld [vmem:[#allocation2] sm:$0xff] }
 0x5aa   : > { %765 = vmatmul.mubr.msk.f32.vlgmr.msra.gmra.mrb[2].mxu0 %vm172_vm2, %v403_v54 }
 0x5ab   : > { %v488_v2 = vpop.permute.xlu1 %487 }
 0x67d   : > { %v474_v56 = vpop.f32.mrb[2].mxu0 }
 0x67e   : > { %v478_v57 = vadd.f32 %v704_v55, %v474_v56  ;;  %v766_v58 = vpop.f32.mrb[3].mxu0 }
 0x680   : > { %835 = vtanh.f32 %v478_v57  ;;  %v706_v60 = vmul.f32 -1.442695, %v478_v57 }
 0x682   : > { %837 = vpow2.f32 %v706_v60 }
 0x68a   : > { %v836_v59 = vpop.eup %835 }
 0x68b   : > { %492 = vrot.lane.b32.xlu0 %v836_v59, %s871_s27 }
 0x68c   : > { %v838_v61 = vpop.eup %837 }
 0x68d   : > { %v482_v62 = vadd.f32 1.0, %v838_v61 }
 0x68f   : > { %839 = vrcp.f32 %v482_v62 }
 0x699   : > { %v840_v63 = vpop.eup %839 }
 0x69a   : > { %v490_v3 = vmul.f32 %v840_v63, %v488_v2 }
 0x6fd   : > { %v493_v0 = vpop.permute.xlu0 %492 }
 0x6fe   : > { %v495_v1 = vmul.f32 %v840_v63, %v493_v0 }
 0x700   : > { %497 = vrot.lane.b32.xlu0 %v495_v1, %s872_s28 }
 0x772   : > { %v498_v4 = vpop.permute.xlu0 %497 }
 0x773   : > { %v500_v5 = vadd.f32 %v498_v4, %v490_v3 }
 0x775   : > { %841 = vtanh.f32 %v500_v5 }
 0x77f   : > { %v842_v6 = vpop.eup %841 }
 0x780   : > { %503 = vrot.lane.b32.xlu1 %v842_v6, %s871_s27 }
 0x784   : > { %513 = vrot.lane.b32.xlu1 %v500_v5, %s873_s29 }
 0x7f2   : > { %v504_v7 = vpop.permute.xlu1 %503 }
 0x7f3   : > { %v506_v8 = vmul.f32 %v840_v63, %v504_v7 }
 0x7f5   : > { %508 = vrot.lane.b32.xlu0 %v506_v8, %s872_s28 }
 0x7f6   : > { %v514_v9 = vpop.permute.xlu1 %513 }
 0x7f7   : > { %516 = vst.msk [vmem:[#allocation3] sm:$0xff] %vm172_vm2, %v514_v9 }
 0x7fe   : > { %v520_v10 = vld [vmem:[#allocation3] sm:$0xff] }
 0x7ff   : > { %603 = vrot.lane.b32.xlu1 %v520_v10, %s872_s28 }
 0x867   : > { %v509_v11 = vpop.permute.xlu0 %508 }
 0x868   : > { %511 = vst.msk [vmem:[#allocation2] sm:$0xff] %vm172_vm2, %v509_v11 }
 0x86f   : > { %v519_v12 = vld [vmem:[#allocation2] sm:$0xff] }
 0x870   : > { %776 = vmatmul.mubr.msk.f32.vlgmr.msra.gmra.mrb[2].mxu1 %vm172_vm2, %v519_v12 }
 0x871   : > { %v604_v24 = vpop.permute.xlu1 %603 }
 0x943   : > { %v590_v14 = vpop.f32.mrb[2].mxu1 }
 0x944   : > { %v594_v15 = vadd.f32 %v707_v13, %v590_v14  ;;  %v777_v16 = vpop.f32.mrb[3].mxu1 }
 0x946   : > { %843 = vtanh.f32 %v594_v15  ;;  %v709_v18 = vmul.f32 -1.442695, %v594_v15 }
 0x948   : > { %845 = vpow2.f32 %v709_v18 }
 0x950   : > { %v844_v17 = vpop.eup %843 }
 0x951   : > { %608 = vrot.lane.b32.xlu0 %v844_v17, %s871_s27 }
 0x952   : > { %v846_v19 = vpop.eup %845 }
 0x953   : > { %v598_v20 = vadd.f32 1.0, %v846_v19 }
 0x955   : > { %847 = vrcp.f32 %v598_v20 }
 0x95f   : > { %v848_v21 = vpop.eup %847 }
 0x960   : > { %v606_v25 = vmul.f32 %v848_v21, %v604_v24 }
 0x9c3   : > { %v609_v22 = vpop.permute.xlu0 %608 }
 0x9c4   : > { %v611_v23 = vmul.f32 %v848_v21, %v609_v22 }
 0x9c6   : > { %613 = vrot.lane.b32.xlu0 %v611_v23, %s872_s28 }
 0xa38   : > { %v614_v26 = vpop.permute.xlu0 %613 }
 0xa39   : > { %v616_v27 = vadd.f32 %v614_v26, %v606_v25 }
 0xa3b   : > { %849 = vtanh.f32 %v616_v27 }
 0xa3c   : > { %851 = vtanh.f32 (!%p710_p5), %v639_v33 }
 0xa3d   : > { %853 = vpow2.f32 (!%p710_p5), %v711_v35 }
 0xa45   : > { %v850_v28 = vpop.eup %849 }
 0xa46   : > { %619 = vrot.lane.b32.xlu1 %v850_v28, %s871_s27  ;;  %v852_v34 = vpop.eup (!%p710_p5), %851 }
 0xa47   : > { %v854_v36 = vpop.eup (!%p710_p5), %853 }
 0xa48   : > { %v643_v37 = vadd.f32 (!%p710_p5), 1.0, %v854_v36 }
 0xa4a   : > { %629 = vrot.lane.b32.xlu1 %v616_v27, %s873_s29  ;;  %855 = vrcp.f32 (!%p710_p5), %v643_v37 }
 0xa54   : > { %v856_v38 = vpop.eup (!%p710_p5), %855 }
 0xab8   : > { %v620_v29 = vpop.permute.xlu1 %619 }
 0xab9   : > { %v622_v30 = vmul.f32 %v848_v21, %v620_v29 }
 0xabb   : > { %624 = vrot.lane.b32.xlu0 %v622_v30, %s872_s28 }
 0xabc   : > { %v630_v31 = vpop.permute.xlu1 %629 }
 0xabd   : > { %632 = vst.msk [vmem:[#allocation3] sm:$0xff] %vm172_vm2, %v630_v31 }
 0xabf   : > { %648 = vrot.lane.b32.xlu0 (!%p710_p5), %v852_v34, %s874_s5 }
 0xb28   : > { %636 = sbr.rel (%p710_p5) target bundleno = 3112 (0xc28), region = 40 }
 0xb2d   : > { %v625_v32 = vpop.permute.xlu0 %624 }
 0xb2e   : > { %627 = vst.msk [vmem:[#allocation2] sm:$0xff] %vm172_vm2, %v625_v32 }
 0xb31   : > { %v649_v39 = vpop.permute.xlu0 %648 }
 0xb32   : > { %v651_v40 = vmul.f32 %v856_v38, %v649_v39 }
 0xb34   : > { %857 = vtanh.f32 %v651_v40 }
 0xb35   : > { %v637_v42 = vld [vmem:[#allocation2] sm:$0xff] }
 0xb36   : > { %638 = vst.msk [vmem:[%s1000_s3] sm:$0xff] %vm172_vm2, %v637_v42 }
 0xb3e   : > { %v858_v41 = vpop.eup %857 }
 0xb3f   : > { %654 = vrot.lane.b32.xlu0 %v858_v41, %s875_s6 }
 0xbb1   : > { %v655_v43 = vpop.permute.xlu0 %654 }
 0xbb2   : > { %v657_v44 = vmul.f32 %v856_v38, %v655_v43 }
 0xbb4   : > { %659 = vrot.lane.b32.xlu1 %v657_v44, %s874_s5 }
 0xc26   : > { %v660_v45 = vpop.permute.xlu1 %659 }
 0xc27   : > { %663 = vst.msk [vmem:[%s1000_s3] sm:$0xff] %vm662_vm3, %v660_v45 }
 0xc28 PF: > { %s13_s12 = sadd.s32 1, %s865_s12  }
 0xc29   : > { %p10_p6 = scmp.ge.s32.totalorder %s13_s12, 4  }
 0xc2b   :  { %12 = sbr.rel (!%p10_p6) target bundleno = 1 (0x1), region = 69 }

</bundles_post_ra>
